<compile_context>
chip_gen: v7x
topology: tpu7x:2x2x1
jax: 0.10.0
libtpu: 0.0.40
codegen_flags: <defaults>
</compile_context>

<pallas_src>
import jax
import jax.numpy as jnp
from jax import lax
from jax.experimental import pallas as pl
from jax.experimental.pallas import tpu as pltpu


def _round_up(x, m):
    return ((x + m - 1) // m) * m


def _make_kernel(n_rows, tile_n, vis_sim, emb_size, pack_pad):
    pack = 2 * emb_size + 2 * vis_sim
    pad = pack_pad - pack

    def _l2n(v, eps=1e-12):
        # torch.nn.functional.normalize(p=2, dim=1): v / max(||v||, eps)
        ss = jnp.sum(v * v, axis=1, keepdims=True)
        return v * lax.rsqrt(jnp.maximum(ss, eps * eps))

    def kernel(x_ref, noise_ref, w1_ref, b1_ref, w2_ref, b2_ref,
               wd1_ref, bd1_ref, wd2_ref, bd2_ref, packed_ref, klp_ref):
        f32 = jnp.float32
        x = x_ref[...].astype(f32)

        # hyb_emb = F.normalize(x, p=2, dim=1)        (rsqrt -> EUP slot)
        sumsq = jnp.sum(x * x, axis=1, keepdims=True)
        hyb = x * lax.rsqrt(jnp.maximum(sumsq, 1e-24))

        # ---- encoder: relu(hyb @ W1 + b1); single fused layer-2 matmul ----
        h1 = jnp.maximum(
            jnp.dot(hyb, w1_ref[...], preferred_element_type=f32) + b1_ref[...],
            0.0)
        enc = jnp.dot(h1, w2_ref[...], preferred_element_type=f32) + b2_ref[...]
        mu = enc[:, :vis_sim]          # in-vreg lane split of the 2*mid output
        sigma = enc[:, vis_sim:]

        # reparameterization (matches reference: randn + mu * exp(sigma)**0.5)
        hidden_norm = mu * jnp.exp(0.5 * sigma)
        hidden = noise_ref[...].astype(f32) + hidden_norm

        # ---- decoder (ReLU after every layer) ----
        d1 = jnp.maximum(
            jnp.dot(hidden, wd1_ref[...], preferred_element_type=f32) + bd1_ref[...],
            0.0)
        dec = jnp.maximum(
            jnp.dot(d1, wd2_ref[...], preferred_element_type=f32) + bd2_ref[...],
            0.0)

        # ---- per-tile KL partial; only the (possibly ragged) last tile is masked ----
        kl_terms = jnp.exp(sigma) + mu - sigma - 1.0
        klp_ref[...] = jnp.broadcast_to(jnp.sum(kl_terms), (1, 1, 128))
        if n_rows % tile_n != 0:
            @pl.when(pl.program_id(0) == pl.num_programs(0) - 1)
            def _():
                rows = pl.program_id(0) * tile_n + lax.broadcasted_iota(
                    jnp.int32, (tile_n, 1), 0)
                masked = jnp.where(rows < n_rows, kl_terms, 0.0)
                klp_ref[...] = jnp.broadcast_to(jnp.sum(masked), (1, 1, 128))

        # ---- lane-dense packed writeback: one full-width unmasked store ----
        parts = [_l2n(dec), hyb, _l2n(hidden), _l2n(hidden_norm)]
        if pad:
            parts.append(jnp.zeros((tile_n, pad), f32))
        packed_ref[...] = jnp.concatenate(parts, axis=1).astype(packed_ref.dtype)

    return kernel


def vir_emb_gen_vae(embs, params, noise, *, tile_n=2048, out_dtype=jnp.bfloat16):
    """embs: list of (N, d_i) arrays (None entries allowed).

    Returns (F.normalize(hidden), F.normalize(hidden_norm),
             F.normalize(decoder_output), kl_div, hyb_emb).

    tile_n guidance: ~2048 on v7x (64 MiB physical VMEM; also keep >= 2 tiles
    so the "parallel" row axis can shard across both TensorCores), 4096-8192 on
    v6e/v5e (128 MiB VMEM). out_dtype=jnp.float32 restores exact f32 writeback
    at ~2x the output HBM traffic.
    """
    embs = [e for e in embs if e is not None]
    # One-time XLA concat in the wrapper (per review): one dense row input.
    x = embs[0] if len(embs) == 1 else jnp.concatenate(embs, axis=1)
    n, emb_size = x.shape
    vis_dim = params["w1"].shape[1]
    vis_sim = params["wd1"].shape[0]

    tile_n = max(8, min(_round_up(int(tile_n), 8), _round_up(n, 8)))
    grid_n = pl.cdiv(n, tile_n)

    pack = 2 * emb_size + 2 * vis_sim
    pack_pad = _round_up(pack, 128)          # lane-dense, 128-multiple slab

    # Scale scoped VMEM with the tile: double-buffered row tiles + roughly a
    # dozen lane-padded (tile_n, 128) f32 compiler temporaries (~11 KiB/row).
    # Stays ~32 MiB at the default tile_n=2048, safely under v7x's 64 MiB.
    vmem_limit = int(min(100 * 2**20, max(32 * 2**20, tile_n * 16 * 1024)))

    def row_spec(d):
        return pl.BlockSpec((tile_n, d), lambda i: (i, 0))

    def const_spec(a):
        return pl.BlockSpec(tuple(a.shape), lambda i: (0,) * a.ndim)

    w_order = ("w1", "b1", "w2", "b2", "wd1", "bd1", "wd2", "bd2")
    in_specs = ([row_spec(emb_size), row_spec(vis_sim)]
                + [const_spec(params[k]) for k in w_order])
    out_specs = (
        pl.BlockSpec((tile_n, pack_pad), lambda i: (i, 0)),
        pl.BlockSpec((1, 1, 128), lambda i: (i, 0, 0)),
    )
    out_shape = (
        jax.ShapeDtypeStruct((n, pack_pad), out_dtype),     # packed outputs
        jax.ShapeDtypeStruct((grid_n, 1, 128), jnp.float32),  # KL partials
    )

    flops = 2 * n * (emb_size * vis_dim + vis_dim * 2 * vis_sim
                     + vis_sim * vis_dim + vis_dim * emb_size)
    w_bytes = 4 * sum(int(params[k].size) for k in w_order)
    out_itemsize = jnp.dtype(out_dtype).itemsize
    cost = pl.CostEstimate(
        flops=flops,
        transcendentals=n * (2 * vis_sim + 4),
        bytes_accessed=(4 * n * (emb_size + vis_sim) + w_bytes
                        + n * pack_pad * out_itemsize + grid_n * 128 * 4))

    kernel = _make_kernel(n, tile_n, vis_sim, emb_size, pack_pad)
    packed, klp = pl.pallas_call(
        kernel,
        out_shape=out_shape,
        grid_spec=pltpu.PrefetchScalarGridSpec(
            num_scalar_prefetch=0,
            grid=(grid_n,),
            in_specs=in_specs,
            out_specs=out_specs,
        ),
        compiler_params=pltpu.CompilerParams(
            dimension_semantics=("parallel",),
            vmem_limit_bytes=vmem_limit,
        ),
        cost_estimate=cost,
    )(x, noise, *(params[k] for k in w_order))

    dec = packed[:, :emb_size]
    hyb = packed[:, emb_size:2 * emb_size]
    hid = packed[:, 2 * emb_size:2 * emb_size + vis_sim]
    hidn = packed[:, 2 * emb_size + vis_sim:pack]
    kl = 0.5 * jnp.sum(klp[:, 0, 0]) / jnp.float32(n * emb_size)
    return hid, hidn, dec, kl, hyb


def init_params(key, emb_size, vis_dim, vis_sim):
    """Deterministic synthetic params. Weights stored (in, out); bias (1, out)."""
    ks = jax.random.split(key, 8)

    def lin(kw, kb, fan_in, fan_out):
        bound = 1.0 / jnp.sqrt(jnp.float32(fan_in))
        w = jax.random.uniform(kw, (fan_in, fan_out), jnp.float32, -bound, bound)
        b = jax.random.uniform(kb, (1, fan_out), jnp.float32, -bound, bound)
        return w, b

    w1, b1 = lin(ks[0], ks[1], emb_size, vis_dim)       # encoder: emb -> vis_dim
    w2, b2 = lin(ks[2], ks[3], vis_dim, 2 * vis_sim)    # encoder: vis_dim -> 2*mid
    wd1, bd1 = lin(ks[4], ks[5], vis_sim, vis_dim)      # decoder: mid -> vis_dim
    wd2, bd2 = lin(ks[6], ks[7], vis_dim, emb_size)     # decoder: vis_dim -> emb
    return dict(w1=w1, b1=b1, w2=w2, b2=b2, wd1=wd1, bd1=bd1, wd2=wd2, bd2=bd2)


def _reference(embs, params, noise):
    """Plain-JAX forward matching the PyTorch module (for verification)."""
    embs = [e for e in embs if e is not None]
    x = jnp.concatenate(embs, axis=1)

    def nrm(v):
        return v / jnp.maximum(jnp.linalg.norm(v, axis=1, keepdims=True), 1e-12)

    hyb = nrm(x)
    h1 = jax.nn.relu(hyb @ params["w1"] + params["b1"])
    enc = h1 @ params["w2"] + params["b2"]
    mu, sigma = jnp.split(enc, 2, axis=1)
    scale = jnp.exp(0.5 * sigma)
    hidden_norm = mu * scale
    hidden = noise + hidden_norm
    d1 = jax.nn.relu(hidden @ params["wd1"] + params["bd1"])
    dec = jax.nn.relu(d1 @ params["wd2"] + params["bd2"])
    kl = 0.5 * jnp.sum(jnp.exp(sigma) + mu - sigma - 1.0) / (x.shape[0] * x.shape[1])
    return nrm(hidden), nrm(hidden_norm), nrm(dec), kl, hyb


if __name__ == "__main__":
    # Config consistent with VirEmbGen_vae(modal_num=3):
    #   ent_dim=32, attr_dim=16 -> emb_size = 32+16+16 = 64
    #   hidden_list=[vis_dim=32], mid_hid=vis_sim=8
    N, ent_dim, attr_dim = 256, 32, 16
    vis_dim, vis_sim = 32, 8
    emb_size = ent_dim + attr_dim + attr_dim

    key = jax.random.PRNGKey(0)
    k_e1, k_e2, k_e3, k_p, k_n = jax.random.split(key, 5)

    embs = [
        jax.random.normal(k_e1, (N, ent_dim), jnp.float32),
        jax.random.normal(k_e2, (N, attr_dim), jnp.float32),
        jax.random.normal(k_e3, (N, attr_dim), jnp.float32),
    ]
    params = init_params(k_p, emb_size, vis_dim, vis_sim)
    # randn_like(sigma) noise, generated deterministically outside the kernel
    noise = jax.random.normal(k_n, (N, vis_sim), jnp.float32)

    # tile_n=128 -> grid of 2 tiles, exercising the pipelined/parallel grid.
    outs = jax.block_until_ready(vir_emb_gen_vae(embs, params, noise, tile_n=128))
    hid, hidn, dec, kl, hyb = outs
    assert hid.shape == (N, vis_sim)
    assert hidn.shape == (N, vis_sim)
    assert dec.shape == (N, emb_size)
    assert hyb.shape == (N, emb_size)
    assert kl.shape == ()

    # Correctness check against the plain-JAX reference (bf16-output tolerances).
    r_hid, r_hidn, r_dec, r_kl, r_hyb = _reference(embs, params, noise)
    for a, b in ((hid, r_hid), (hidn, r_hidn), (dec, r_dec), (hyb, r_hyb)):
        a32 = a.astype(jnp.float32)
        assert bool(jnp.allclose(a32, b, atol=5e-3, rtol=2e-2)), \
            float(jnp.max(jnp.abs(a32 - b)))
    assert bool(jnp.allclose(kl, r_kl, atol=2e-3, rtol=2e-2)), float(kl - r_kl)

    print("KERNEL_OK")
</pallas_src>

<mosaic_0001>
module attributes {stable_mosaic.version = 11 : i64} {
  func.func @kernel(%arg0: i32, %arg1: memref<128x64xf32, #tpu.memory_space<vmem>>, %arg2: memref<128x8xf32, #tpu.memory_space<vmem>>, %arg3: memref<64x32xf32, #tpu.memory_space<vmem>>, %arg4: memref<1x32xf32, #tpu.memory_space<vmem>>, %arg5: memref<32x16xf32, #tpu.memory_space<vmem>>, %arg6: memref<1x16xf32, #tpu.memory_space<vmem>>, %arg7: memref<8x32xf32, #tpu.memory_space<vmem>>, %arg8: memref<1x32xf32, #tpu.memory_space<vmem>>, %arg9: memref<32x64xf32, #tpu.memory_space<vmem>>, %arg10: memref<1x64xf32, #tpu.memory_space<vmem>>, %arg11: memref<128x256xbf16, #tpu.memory_space<vmem>>, %arg12: memref<1x1x128xf32, #tpu.memory_space<vmem>>) attributes {dimension_semantics = [#tpu.dimension_semantics<parallel>], iteration_bounds = array<i64: 2>, scalar_prefetch = 0 : i64, scratch_operands = 0 : i64, tpu.core_type = #tpu.core_type<tc>, window_params = [{transform_indices = @transform_0, window_bounds = array<i64: 128, 64>}, {transform_indices = @transform_1, window_bounds = array<i64: 128, 8>}, {pipeline_mode = #tpu.pipeline_mode<synchronous>, transform_indices = @transform_2, window_bounds = array<i64: 64, 32>}, {pipeline_mode = #tpu.pipeline_mode<synchronous>, transform_indices = @transform_3, window_bounds = array<i64: 1, 32>}, {pipeline_mode = #tpu.pipeline_mode<synchronous>, transform_indices = @transform_4, window_bounds = array<i64: 32, 16>}, {pipeline_mode = #tpu.pipeline_mode<synchronous>, transform_indices = @transform_5, window_bounds = array<i64: 1, 16>}, {pipeline_mode = #tpu.pipeline_mode<synchronous>, transform_indices = @transform_6, window_bounds = array<i64: 8, 32>}, {pipeline_mode = #tpu.pipeline_mode<synchronous>, transform_indices = @transform_7, window_bounds = array<i64: 1, 32>}, {pipeline_mode = #tpu.pipeline_mode<synchronous>, transform_indices = @transform_8, window_bounds = array<i64: 32, 64>}, {pipeline_mode = #tpu.pipeline_mode<synchronous>, transform_indices = @transform_9, window_bounds = array<i64: 1, 64>}, {transform_indices = @transform_10, window_bounds = array<i64: 128, 256>}, {transform_indices = @transform_11, window_bounds = array<i64: 1, 1, 128>}]} {
    %c0 = arith.constant 0 : index
    %c0_0 = arith.constant 0 : index
    %0 = vector.load %arg1[%c0, %c0_0] : memref<128x64xf32, #tpu.memory_space<vmem>>, vector<128x64xf32>
    %1 = arith.mulf %0, %0 : vector<128x64xf32>
    %cst = arith.constant dense<0.000000e+00> : vector<128xf32>
    %2 = vector.multi_reduction <add>, %1, %cst [1] : vector<128x64xf32> to vector<128xf32>
    %3 = vector.shape_cast %2 : vector<128xf32> to vector<128x1xf32>
    %cst_1 = arith.constant 1.000000e-24 : f32
    %4 = vector.broadcast %cst_1 : f32 to vector<128x1xf32>
    %5 = arith.maximumf %3, %4 : vector<128x1xf32>
    %6 = math.rsqrt %5 : vector<128x1xf32>
    %7 = vector.broadcast %6 : vector<128x1xf32> to vector<128x64xf32>
    %8 = arith.mulf %0, %7 : vector<128x64xf32>
    %c0_2 = arith.constant 0 : index
    %c0_3 = arith.constant 0 : index
    %9 = vector.load %arg3[%c0_2, %c0_3] : memref<64x32xf32, #tpu.memory_space<vmem>>, vector<64x32xf32>
    %cst_4 = arith.constant dense<0.000000e+00> : vector<128x32xf32>
    %10 = tpu.matmul %8, %9, %cst_4 {dimension_numbers = #tpu.dot_dimension_numbers<[1], [0], [0], [1], [0, 0, 1, 1], [], []>} : vector<128x64xf32>, vector<64x32xf32>, vector<128x32xf32> -> vector<128x32xf32>
    %c0_5 = arith.constant 0 : index
    %c0_6 = arith.constant 0 : index
    %11 = vector.load %arg4[%c0_5, %c0_6] : memref<1x32xf32, #tpu.memory_space<vmem>>, vector<1x32xf32>
    %12 = vector.broadcast %11 : vector<1x32xf32> to vector<128x32xf32>
    %13 = arith.addf %10, %12 : vector<128x32xf32>
    %cst_7 = arith.constant 0.000000e+00 : f32
    %14 = vector.broadcast %cst_7 : f32 to vector<128x32xf32>
    %15 = arith.maximumf %13, %14 : vector<128x32xf32>
    %c0_8 = arith.constant 0 : index
    %c0_9 = arith.constant 0 : index
    %16 = vector.load %arg5[%c0_8, %c0_9] : memref<32x16xf32, #tpu.memory_space<vmem>>, vector<32x16xf32>
    %cst_10 = arith.constant dense<0.000000e+00> : vector<128x16xf32>
    %17 = tpu.matmul %15, %16, %cst_10 {dimension_numbers = #tpu.dot_dimension_numbers<[1], [0], [0], [1], [0, 0, 1, 1], [], []>} : vector<128x32xf32>, vector<32x16xf32>, vector<128x16xf32> -> vector<128x16xf32>
    %c0_11 = arith.constant 0 : index
    %c0_12 = arith.constant 0 : index
    %18 = vector.load %arg6[%c0_11, %c0_12] : memref<1x16xf32, #tpu.memory_space<vmem>>, vector<1x16xf32>
    %19 = vector.broadcast %18 : vector<1x16xf32> to vector<128x16xf32>
    %20 = arith.addf %17, %19 : vector<128x16xf32>
    %21 = vector.extract_strided_slice %20 {offsets = [0, 0], sizes = [128, 8], strides = [1, 1]} : vector<128x16xf32> to vector<128x8xf32>
    %22 = vector.extract_strided_slice %20 {offsets = [0, 8], sizes = [128, 8], strides = [1, 1]} : vector<128x16xf32> to vector<128x8xf32>
    %cst_13 = arith.constant 5.000000e-01 : f32
    %23 = vector.broadcast %cst_13 : f32 to vector<128x8xf32>
    %24 = arith.mulf %23, %22 : vector<128x8xf32>
    %25 = math.exp %24 : vector<128x8xf32>
    %26 = arith.mulf %21, %25 : vector<128x8xf32>
    %c0_14 = arith.constant 0 : index
    %c0_15 = arith.constant 0 : index
    %27 = vector.load %arg2[%c0_14, %c0_15] : memref<128x8xf32, #tpu.memory_space<vmem>>, vector<128x8xf32>
    %28 = arith.addf %27, %26 : vector<128x8xf32>
    %c0_16 = arith.constant 0 : index
    %c0_17 = arith.constant 0 : index
    %29 = vector.load %arg7[%c0_16, %c0_17] : memref<8x32xf32, #tpu.memory_space<vmem>>, vector<8x32xf32>
    %cst_18 = arith.constant dense<0.000000e+00> : vector<128x32xf32>
    %30 = tpu.matmul %28, %29, %cst_18 {dimension_numbers = #tpu.dot_dimension_numbers<[1], [0], [0], [1], [0, 0, 1, 1], [], []>} : vector<128x8xf32>, vector<8x32xf32>, vector<128x32xf32> -> vector<128x32xf32>
    %c0_19 = arith.constant 0 : index
    %c0_20 = arith.constant 0 : index
    %31 = vector.load %arg8[%c0_19, %c0_20] : memref<1x32xf32, #tpu.memory_space<vmem>>, vector<1x32xf32>
    %32 = vector.broadcast %31 : vector<1x32xf32> to vector<128x32xf32>
    %33 = arith.addf %30, %32 : vector<128x32xf32>
    %cst_21 = arith.constant 0.000000e+00 : f32
    %34 = vector.broadcast %cst_21 : f32 to vector<128x32xf32>
    %35 = arith.maximumf %33, %34 : vector<128x32xf32>
    %c0_22 = arith.constant 0 : index
    %c0_23 = arith.constant 0 : index
    %36 = vector.load %arg9[%c0_22, %c0_23] : memref<32x64xf32, #tpu.memory_space<vmem>>, vector<32x64xf32>
    %cst_24 = arith.constant dense<0.000000e+00> : vector<128x64xf32>
    %37 = tpu.matmul %35, %36, %cst_24 {dimension_numbers = #tpu.dot_dimension_numbers<[1], [0], [0], [1], [0, 0, 1, 1], [], []>} : vector<128x32xf32>, vector<32x64xf32>, vector<128x64xf32> -> vector<128x64xf32>
    %c0_25 = arith.constant 0 : index
    %c0_26 = arith.constant 0 : index
    %38 = vector.load %arg10[%c0_25, %c0_26] : memref<1x64xf32, #tpu.memory_space<vmem>>, vector<1x64xf32>
    %39 = vector.broadcast %38 : vector<1x64xf32> to vector<128x64xf32>
    %40 = arith.addf %37, %39 : vector<128x64xf32>
    %cst_27 = arith.constant 0.000000e+00 : f32
    %41 = vector.broadcast %cst_27 : f32 to vector<128x64xf32>
    %42 = arith.maximumf %40, %41 : vector<128x64xf32>
    %43 = math.exp %22 : vector<128x8xf32>
    %44 = arith.addf %43, %21 : vector<128x8xf32>
    %45 = arith.subf %44, %22 : vector<128x8xf32>
    %cst_28 = arith.constant 1.000000e+00 : f32
    %46 = vector.broadcast %cst_28 : f32 to vector<128x8xf32>
    %47 = arith.subf %45, %46 : vector<128x8xf32>
    %48 = vector.shape_cast %47 : vector<128x8xf32> to vector<1x128x8xf32>
    %cst_29 = arith.constant dense<0.000000e+00> : vector<1xf32>
    %49 = vector.multi_reduction <add>, %48, %cst_29 [1, 2] : vector<1x128x8xf32> to vector<1xf32>
    %50 = vector.shape_cast %49 : vector<1xf32> to vector<1x1x1xf32>
    %51 = vector.extract %50[0, 0, 0] : f32 from vector<1x1x1xf32>
    %52 = vector.broadcast %51 : f32 to vector<1x1x128xf32>
    %c0_30 = arith.constant 0 : index
    %c0_31 = arith.constant 0 : index
    %c0_32 = arith.constant 0 : index
    %53 = vector.load %arg12[%c0_30, %c0_31, %c0_32] : memref<1x1x128xf32, #tpu.memory_space<vmem>>, vector<1x1x128xf32>
    tpu.vector_store %arg12[%c0_30, %c0_31, %c0_32], %52 {strides = array<i32>} : memref<1x1x128xf32, #tpu.memory_space<vmem>>, vector<1x1x128xf32>,
    %54 = arith.mulf %42, %42 : vector<128x64xf32>
    %cst_33 = arith.constant dense<0.000000e+00> : vector<128xf32>
    %55 = vector.multi_reduction <add>, %54, %cst_33 [1] : vector<128x64xf32> to vector<128xf32>
    %56 = vector.shape_cast %55 : vector<128xf32> to vector<128x1xf32>
    %cst_34 = arith.constant 1.000000e-24 : f32
    %57 = vector.broadcast %cst_34 : f32 to vector<128x1xf32>
    %58 = arith.maximumf %56, %57 : vector<128x1xf32>
    %59 = math.rsqrt %58 : vector<128x1xf32>
    %60 = vector.broadcast %59 : vector<128x1xf32> to vector<128x64xf32>
    %61 = arith.mulf %42, %60 : vector<128x64xf32>
    %62 = arith.mulf %28, %28 : vector<128x8xf32>
    %cst_35 = arith.constant dense<0.000000e+00> : vector<128xf32>
    %63 = vector.multi_reduction <add>, %62, %cst_35 [1] : vector<128x8xf32> to vector<128xf32>
    %64 = vector.shape_cast %63 : vector<128xf32> to vector<128x1xf32>
    %cst_36 = arith.constant 1.000000e-24 : f32
    %65 = vector.broadcast %cst_36 : f32 to vector<128x1xf32>
    %66 = arith.maximumf %64, %65 : vector<128x1xf32>
    %67 = math.rsqrt %66 : vector<128x1xf32>
    %68 = vector.broadcast %67 : vector<128x1xf32> to vector<128x8xf32>
    %69 = arith.mulf %28, %68 : vector<128x8xf32>
    %70 = arith.mulf %26, %26 : vector<128x8xf32>
    %cst_37 = arith.constant dense<0.000000e+00> : vector<128xf32>
    %71 = vector.multi_reduction <add>, %70, %cst_37 [1] : vector<128x8xf32> to vector<128xf32>
    %72 = vector.shape_cast %71 : vector<128xf32> to vector<128x1xf32>
    %cst_38 = arith.constant 1.000000e-24 : f32
    %73 = vector.broadcast %cst_38 : f32 to vector<128x1xf32>
    %74 = arith.maximumf %72, %73 : vector<128x1xf32>
    %75 = math.rsqrt %74 : vector<128x1xf32>
    %76 = vector.broadcast %75 : vector<128x1xf32> to vector<128x8xf32>
    %77 = arith.mulf %26, %76 : vector<128x8xf32>
    %cst_39 = arith.constant 0.000000e+00 : f32
    %78 = vector.broadcast %cst_39 : f32 to vector<128x112xf32>
    %79 = tpu.concatenate %61, %8, %69, %77, %78 in 1 : vector<128x64xf32>, vector<128x64xf32>, vector<128x8xf32>, vector<128x8xf32>, vector<128x112xf32> -> vector<128x256xf32>
    %80 = arith.truncf %79 : vector<128x256xf32> to vector<128x256xbf16>
    %c0_40 = arith.constant 0 : index
    %c0_41 = arith.constant 0 : index
    %81 = vector.load %arg11[%c0_40, %c0_41] : memref<128x256xbf16, #tpu.memory_space<vmem>>, vector<128x256xbf16>
    tpu.vector_store %arg11[%c0_40, %c0_41], %80 {strides = array<i32>} : memref<128x256xbf16, #tpu.memory_space<vmem>>, vector<128x256xbf16>,
    return
  }
  func.func @transform_0(%arg0: i32) -> (i32, i32) {
    %c0_i32 = arith.constant 0 : i32
    %c0_i32_0 = arith.constant 0 : i32
    return %arg0, %c0_i32 : i32, i32
  }
  func.func @transform_1(%arg0: i32) -> (i32, i32) {
    %c0_i32 = arith.constant 0 : i32
    %c0_i32_0 = arith.constant 0 : i32
    return %arg0, %c0_i32 : i32, i32
  }
  func.func @transform_2(%arg0: i32) -> (i32, i32) {
    %c0_i32 = arith.constant 0 : i32
    %c0_i32_0 = arith.constant 0 : i32
    %c0_i32_1 = arith.constant 0 : i32
    return %c0_i32, %c0_i32_0 : i32, i32
  }
  func.func @transform_3(%arg0: i32) -> (i32, i32) {
    %c0_i32 = arith.constant 0 : i32
    %c0_i32_0 = arith.constant 0 : i32
    %c0_i32_1 = arith.constant 0 : i32
    return %c0_i32, %c0_i32_0 : i32, i32
  }
  func.func @transform_4(%arg0: i32) -> (i32, i32) {
    %c0_i32 = arith.constant 0 : i32
    %c0_i32_0 = arith.constant 0 : i32
    %c0_i32_1 = arith.constant 0 : i32
    return %c0_i32, %c0_i32_0 : i32, i32
  }
  func.func @transform_5(%arg0: i32) -> (i32, i32) {
    %c0_i32 = arith.constant 0 : i32
    %c0_i32_0 = arith.constant 0 : i32
    %c0_i32_1 = arith.constant 0 : i32
    return %c0_i32, %c0_i32_0 : i32, i32
  }
  func.func @transform_6(%arg0: i32) -> (i32, i32) {
    %c0_i32 = arith.constant 0 : i32
    %c0_i32_0 = arith.constant 0 : i32
    %c0_i32_1 = arith.constant 0 : i32
    return %c0_i32, %c0_i32_0 : i32, i32
  }
  func.func @transform_7(%arg0: i32) -> (i32, i32) {
    %c0_i32 = arith.constant 0 : i32
    %c0_i32_0 = arith.constant 0 : i32
    %c0_i32_1 = arith.constant 0 : i32
    return %c0_i32, %c0_i32_0 : i32, i32
  }
  func.func @transform_8(%arg0: i32) -> (i32, i32) {
    %c0_i32 = arith.constant 0 : i32
    %c0_i32_0 = arith.constant 0 : i32
    %c0_i32_1 = arith.constant 0 : i32
    return %c0_i32, %c0_i32_0 : i32, i32
  }
  func.func @transform_9(%arg0: i32) -> (i32, i32) {
    %c0_i32 = arith.constant 0 : i32
    %c0_i32_0 = arith.constant 0 : i32
    %c0_i32_1 = arith.constant 0 : i32
    return %c0_i32, %c0_i32_0 : i32, i32
  }
  func.func @transform_10(%arg0: i32) -> (i32, i32) {
    %c0_i32 = arith.constant 0 : i32
    %c0_i32_0 = arith.constant 0 : i32
    return %arg0, %c0_i32 : i32, i32
  }
  func.func @transform_11(%arg0: i32) -> (i32, i32, i32) {
    %c0_i32 = arith.constant 0 : i32
    %c0_i32_0 = arith.constant 0 : i32
    %c0_i32_1 = arith.constant 0 : i32
    return %arg0, %c0_i32, %c0_i32_0 : i32, i32, i32
  }
}

</mosaic_0001>

<bundles_post_ra>
// kernel: tpu_custom_call.1
= control target key start
LH: loop header
LB: loop body
LE: loop exit
PB: predicated region body
PF: predicated region fallthrough
CT: control target
= control target key end

     0   :  { %s4788_s0 = inlined_call_operand.vmem [shape: f32[256,64], index: 0, kind: input, shape index: {}]   ;;  %s4789_s1 = inlined_call_operand.vmem [shape: f32[256,8], index: 1, kind: input, shape index: {}]   ;;  %s4790_s2 = inlined_call_operand.vmem [shape: f32[64,32], index: 2, kind: input, shape index: {}]   ;;  %s4791_s3 = inlined_call_operand.vmem [shape: f32[1,32], index: 3, kind: input, shape index: {}]   ;;  %s4792_s4 = inlined_call_operand.vmem [shape: f32[32,16], index: 4, kind: input, shape index: {}]   ;;  %s4793_s5 = inlined_call_operand.vmem [shape: f32[1,16], index: 5, kind: input, shape index: {}]   ;;  %s4794_s6 = inlined_call_operand.vmem [shape: f32[8,32], index: 6, kind: input, shape index: {}]   ;;  %s4795_s7 = inlined_call_operand.vmem [shape: f32[1,32], index: 7, kind: input, shape index: {}]   ;;  %s4796_s8 = inlined_call_operand.vmem [shape: f32[32,64], index: 8, kind: input, shape index: {}]   ;;  %s4797_s9 = inlined_call_operand.vmem [shape: f32[1,64], index: 9, kind: input, shape index: {}]   ;;  %s4798_s10 = inlined_call_operand.hbm [shape: bf16[256,256], index: 10, kind: output, shape index: {0}]   ;;  %s4799_s11 = inlined_call_operand.hbm [shape: f32[2,1,128], index: 11, kind: output, shape index: {1}]  }
   0x1   :  { %4817 = sst [smem:[#allocation22_spill]] %s4788_s0 }
   0x2   :  { %4818 = sst [smem:[#allocation23_spill]] %s4789_s1 }
   0x3   :  { %4819 = sst [smem:[#allocation24_spill]] %s4790_s2 }
   0x4   :  { %17 = vsyncpa [#allocation3], 0 }
   0x5   :  { %19 = vsyncpa [#allocation3 + $0x1], 0 }
   0x6   :  { %20 = vsyncpa [#allocation5], 0 }
   0x7   :  { %22 = vsyncpa [#allocation5 + $0x1], 0  ;;  %s3434_s17 = smov 0   ;;  %s3436_s18 = smov 0  }
   0x8   :  { %s3438_s19 = smov 0   ;;  %s3440_s20 = smov 0  }
   0x9 LB: > { %s3455_s21 = sadd.s32 4294967295, %s3366_s20   ;;  %s2569_s22 = sadd.s32 4294967294, %s3366_s20   ;;  %s3366_s20 = sphi %s3440_s20, %s4868_s20   ;;  %s3362_s19 = sphi %s3438_s19, %s4867_s19   ;;  %s3358_s18 = sphi %s3436_s18, %s4866_s18   ;;  %s3354_s17 = sphi %s3434_s17, %s4865_s17  }
   0xa   : > { %s3459_s23 = sadd.s32 1, %s3366_s20   ;;  %s255_s24 = sadd.s32 1, %s3362_s19 }
   0xb   : > { %s252_s25 = ssub.s32 %s3366_s20, %s3459_s23  ;;  %p265_p0 = scmp.ne.s32.totalorder %s3362_s19, %s3358_s18 }
   0xc   : > { %p253_p1 = scmp.eq.s32.totalorder %s252_s25, 0  ;;  %p266_p2 = scmp.eq.s32.totalorder %s3455_s21, 1 }
   0xd   : > { %p271_p3 = scmp.ne.s32.totalorder %s3358_s18, %s3354_s17  ;;  %p272_p4 = scmp.eq.s32.totalorder %s2569_s22, 1 }
   0xe   : > { %s3470_s26 = scalar_select %p253_p1, %s3362_s19, %s255_s24  }
   0xf   : > { %p3472_p5 = por %p266_p2, %p265_p0  ;;  %p3476_p6 = por %p272_p4, %p271_p3 }
  0x10   : > { %p2572_p7 = scmp.ge.s32.totalorder %s3366_s20, 1  ;;  %p358_p8 = scmp.lt.s32.totalorder %s3366_s20, 3 }
  0x12   : > { %p359_p9 = pnand %p2572_p7, %p358_p8 }
  0x14   : > { %362 = sbr.rel (%p359_p9) target bundleno = 1499 (0x5db), region = 60 }
  0x1b   : > { %s3483_s29 = sshll.u32 %s3455_s21, 4  ;;  %s4822_s0 = sld [smem:[#allocation22_spill]]  ;;  %vm452_vm0 = vcmask 523264   ;;  %v773_v60 = vld [vmem:[%s4792_s4] sm:$0xff]  ;;  %v774_v61 = vld [vmem:[%s4792_s4 + $0x8] sm:$0xff]  ;;  %vm784_vm1 = vcmask 261120  }
  0x1c   : > { %p408_p10 = scmp.lt.s32.totalorder %s3483_s29, 31  ;;  %s4823_s2 = sld [smem:[#allocation24_spill]]  ;;  %v2930_v62 = vpack.c.bf16 %v774_v61, %v773_v60  ;;  %vm1146_vm2 = vcmask 64512  }
  0x1d   : > { %s3368_s16 = smov 120   ;;  %s4816_s22 = smov 8  }
  0x1e   : > { %s3487_s30 = scalar_select %p408_p10, %s3483_s29, 31  ;;  %2931 = vmatprep.subr.bf16.mxu1 %v2930_v62 }
  0x1f   : > { %2933 = vmatpush3.bf16.msra.mxu1 %v2930_v62  ;;  %s4829_s1 = sld [smem:[#allocation23_spill]]  ;;  %s4508_s13 = scalar_lea.hbm %s4799_s11, %s3483_s29 }
  0x20   : > { %s4800_s12 = sshll.u32 %s3487_s30, 3  ;;  %s4828_s24 = sshll.u32 %s3487_s30, 3 }
  0x21   : > { %s3495_s15 = scalar_lea.vmem %s4822_s0, %s4800_s12  ;;  %s3371_s0 = smov [#allocation4]  }
  0x22   : > { %v3498_v0 = vld [vmem:[%s3495_s15 + $0x10] sm:$0xff]  ;;  %v3501_v1 = vld [vmem:[%s3495_s15] sm:$0xff]  ;;  %v3504_v2 = vld [vmem:[%s3495_s15 + $0x18] sm:$0xff] }
  0x23   : > { %v438_v3 = vmul.f32 %v3498_v0, %v3498_v0  ;;  %v436_v4 = vmul.f32 %v3501_v1, %v3501_v1  ;;  %v439_v5 = vmul.f32 %v3504_v2, %v3504_v2  ;;  %v3513_v6 = vld [vmem:[%s3495_s15 + $0x8] sm:$0xff]  ;;  %v3518_v8 = vld [vmem:[%s3495_s15 + $0x20] sm:$0xff]  ;;  %v3532_v16 = vld [vmem:[%s3495_s15 + $0x30] sm:$0xff] }
  0x24   : > { %v437_v7 = vmul.f32 %v3513_v6, %v3513_v6  ;;  %v3521_v9 = vld [vmem:[%s3495_s15 + $0x28] sm:$0xff]  ;;  %v440_v14 = vmul.f32 %v3518_v8, %v3518_v8  ;;  %v3535_v17 = vld [vmem:[%s3495_s15 + $0x38] sm:$0xff]  ;;  %v442_v20 = vmul.f32 %v3532_v16, %v3532_v16  ;;  %v3544_v22 = vld [vmem:[%s3495_s15 + $0x40] sm:$0xff] }
  0x25   : > { %v459_v10 = vsel %vm452_vm0, %v438_v3, 0.0  ;;  %v453_v11 = vsel %vm452_vm0, %v436_v4, 0.0  ;;  %v462_v12 = vsel %vm452_vm0, %v439_v5, 0.0  ;;  %v441_v15 = vmul.f32 %v3521_v9, %v3521_v9  ;;  %v3547_v23 = vld [vmem:[%s3495_s15 + $0x48] sm:$0xff]  ;;  %v3556_v28 = vld [vmem:[%s3495_s15 + $0x50] sm:$0xff]  ;;  %v3559_v29 = vld [vmem:[%s3495_s15 + $0x58] sm:$0xff]  ;;  %s3893_s12 = scalar_lea.vmem %s4829_s1, %s4828_s24 }
  0x26   : > { %460 = vadd.xlane.f32.xlu1 %v459_v10  ;;  %454 = vadd.xlane.f32.xlu0 %v453_v11  ;;  %v456_v13 = vsel %vm452_vm0, %v437_v7, 0.0  ;;  %v465_v18 = vsel %vm452_vm0, %v440_v14, 0.0  ;;  %v443_v21 = vmul.f32 %v3535_v17, %v3535_v17  ;;  %v471_v24 = vsel %vm452_vm0, %v442_v20, 0.0  ;;  %v3568_v34 = vld [vmem:[%s3495_s15 + $0x60] sm:$0xff]  ;;  %v3571_v35 = vld [vmem:[%s3495_s15 + $0x68] sm:$0xff]  ;;  %v3586_v43 = vld [vmem:[%s3495_s15 + $0x70] sm:$0xff] }
  0x27   : > { %v468_v19 = vsel %vm452_vm0, %v441_v15, 0.0  ;;  %v444_v26 = vmul.f32 %v3544_v22, %v3544_v22  ;;  %v445_v27 = vmul.f32 %v3547_v23, %v3547_v23  ;;  %v446_v32 = vmul.f32 %v3556_v28, %v3556_v28  ;;  %v549_v36 = vld [vmem:[%s4823_s2] sm:$0xff]  ;;  %v550_v37 = vld [vmem:[%s4823_s2 + $0x8] sm:$0xff]  ;;  %v3589_v44 = vld [vmem:[%s3495_s15 + $0x78] sm:$0xff]  ;;  %s3370_s15 = smov 64   ;;  %s3276_s1 = sshll.u32 %s3371_s0, 4  ;;  %s3277_s1 = int_to_ptr.vmem [resolvable:$false] %s3276_s1 }
  0x28   : > { %v474_v25 = vsel %vm452_vm0, %v443_v21, 0.0  ;;  %v447_v33 = vmul.f32 %v3559_v29, %v3559_v29  ;;  %v2914_v38 = vpack.c.bf16 %v550_v37, %v549_v36  ;;  %v448_v41 = vmul.f32 %v3568_v34, %v3568_v34  ;;  %v551_v45 = vld [vmem:[%s4823_s2 + $0x10] sm:$0xff]  ;;  %v552_v46 = vld [vmem:[%s4823_s2 + $0x18] sm:$0xff]  ;;  %v553_v52 = vld [vmem:[%s4823_s2 + $0x20] sm:$0xff] }
  0x29   : > { %v477_v30 = vsel %vm452_vm0, %v444_v26, 0.0  ;;  %v480_v31 = vsel %vm452_vm0, %v445_v27, 0.0  ;;  %v483_v39 = vsel %vm452_vm0, %v446_v32, 0.0  ;;  %v449_v42 = vmul.f32 %v3571_v35, %v3571_v35  ;;  %v554_v53 = vld [vmem:[%s4823_s2 + $0x28] sm:$0xff]  ;;  %v555_v57 = vld [vmem:[%s4823_s2 + $0x30] sm:$0xff]  ;;  %v556_v58 = vld [vmem:[%s4823_s2 + $0x38] sm:$0xff] }
  0x2a   : > { %463 = vadd.xlane.f32.xlu1 %v462_v12  ;;  %457 = vadd.xlane.f32.xlu0 %v456_v13  ;;  %v486_v40 = vsel %vm452_vm0, %v447_v33, 0.0  ;;  %v2918_v47 = vpack.c.bf16 %v552_v46, %v551_v45  ;;  %v489_v48 = vsel %vm452_vm0, %v448_v41, 0.0  ;;  %v450_v50 = vmul.f32 %v3586_v43, %v3586_v43  ;;  %s3278_s2 = scalar_lea.vmem %s3277_s1, 32 }
  0x2b   : > { %2915 = vmatprep.subr.bf16.mxu0 %v2914_v38  ;;  %v492_v49 = vsel %vm452_vm0, %v449_v42, 0.0  ;;  %v451_v51 = vmul.f32 %v3589_v44, %v3589_v44  ;;  %v2922_v54 = vpack.c.bf16 %v554_v53, %v553_v52  ;;  %v2926_v59 = vpack.c.bf16 %v556_v58, %v555_v57 }
  0x2c   : > { %2917 = vmatpush3.bf16.msra.mxu0 %v2914_v38  ;;  %v495_v55 = vsel %vm452_vm0, %v450_v50, 0.0 }
  0x2d   : > { %2919 = vmatprep.subr.bf16.mxu0 %v2918_v47  ;;  %v498_v56 = vsel %vm452_vm0, %v451_v51, 0.0 }
  0x2e   : > { %466 = vadd.xlane.f32.xlu0 %v465_v18  ;;  %469 = vadd.xlane.f32.xlu1 %v468_v19 }
  0x30   : > { %2921 = vmatpush3.bf16.msra.mxu0 %v2918_v47 }
  0x31   : > { %2923 = vmatprep.subr.bf16.mxu0 %v2922_v54 }
  0x32   : > { %472 = vadd.xlane.f32.xlu0 %v471_v24  ;;  %475 = vadd.xlane.f32.xlu1 %v474_v25 }
  0x34   : > { %2925 = vmatpush3.bf16.msra.mxu0 %v2922_v54 }
  0x35   : > { %2927 = vmatprep.subr.bf16.mxu0 %v2926_v59 }
  0x36   : > { %478 = vadd.xlane.f32.xlu0 %v477_v30  ;;  %481 = vadd.xlane.f32.xlu1 %v480_v31 }
  0x38   : > { %2929 = vmatpush3.bf16.msra.mxu0 %v2926_v59 }
  0x3a   : > { %484 = vadd.xlane.f32.xlu0 %v483_v39  ;;  %487 = vadd.xlane.f32.xlu1 %v486_v40 }
  0x3e   : > { %490 = vadd.xlane.f32.xlu0 %v489_v48  ;;  %493 = vadd.xlane.f32.xlu1 %v492_v49 }
  0x42   : > { %496 = vadd.xlane.f32.xlu0 %v495_v55  ;;  %499 = vadd.xlane.f32.xlu1 %v498_v56 }
  0xb3   : > { %v461_v63 = vpop.xlane.xlu1 %460  ;;  %v455_v3 = vpop.xlane.xlu0 %454 }
  0xb4   : > { %v503_v4 = vmax.f32 %v461_v63, 1e-24  ;;  %v501_v5 = vmax.f32 %v455_v3, 1e-24 }
  0xb6   : > { %3080 = vrsqrt.f32 %v503_v4 }
  0xb7   : > { %3082 = vrsqrt.f32 %v501_v5  ;;  %v464_v7 = vpop.xlane.xlu1 %463  ;;  %v458_v10 = vpop.xlane.xlu0 %457 }
  0xb8   : > { %v504_v11 = vmax.f32 %v464_v7, 1e-24  ;;  %v502_v12 = vmax.f32 %v458_v10, 1e-24 }
  0xba   : > { %3084 = vrsqrt.f32 %v504_v11 }
  0xbb   : > { %3086 = vrsqrt.f32 %v502_v12  ;;  %v467_v13 = vpop.xlane.xlu0 %466  ;;  %v470_v14 = vpop.xlane.xlu1 %469 }
  0xbc   : > { %v505_v15 = vmax.f32 %v467_v13, 1e-24  ;;  %v506_v18 = vmax.f32 %v470_v14, 1e-24 }
  0xbe   : > { %3088 = vrsqrt.f32 %v505_v15 }
  0xbf   : > { %3090 = vrsqrt.f32 %v506_v18  ;;  %v473_v19 = vpop.xlane.xlu0 %472  ;;  %v476_v20 = vpop.xlane.xlu1 %475  ;;  %v2578_v18 = vld [vmem:[%s4791_s3] ss:$0 sm:$0xff] }
  0xc0   : > { %v3081_v21 = vpop.eup %3080  ;;  %v507_v24 = vmax.f32 %v473_v19, 1e-24  ;;  %v508_v25 = vmax.f32 %v476_v20, 1e-24 }
  0xc1   : > { %v3083_v26 = vpop.eup %3082  ;;  %v3627_v32 = vmul.f32 %v3081_v21, %v3498_v0 }
  0xc2   : > { %3092 = vrsqrt.f32 %v507_v24  ;;  %v3624_v27 = vmul.f32 %v3083_v26, %v3501_v1 }
  0xc3   : > { %3094 = vrsqrt.f32 %v508_v25  ;;  %v479_v30 = vpop.xlane.xlu0 %478  ;;  %v482_v31 = vpop.xlane.xlu1 %481 }
  0xc4   : > { %v3085_v33 = vpop.eup %3084  ;;  %2800 = vmatprep.mubr.msk.f32.mxu0 %vm452_vm0, %v3624_v27  ;;  %v509_v36 = vmax.f32 %v479_v30, 1e-24  ;;  %v510_v37 = vmax.f32 %v482_v31, 1e-24 }
  0xc5   : > { %v3087_v38 = vpop.eup %3086  ;;  %v3632_v39 = vmul.f32 %v3085_v33, %v3504_v2 }
  0xc6   : > { %v3635_v40 = vmul.f32 %v3087_v38, %v3513_v6  ;;  %3096 = vrsqrt.f32 %v509_v36 }
  0xc7   : > { %3098 = vrsqrt.f32 %v510_v37  ;;  %v485_v1 = vpop.xlane.xlu0 %484  ;;  %v488_v41 = vpop.xlane.xlu1 %487  ;;  %v3005_v0 = vpack.i.bf16 %v3632_v39, %v3627_v32 }
  0xc8   : > { %v3089_v42 = vpop.eup %3088  ;;  %v3000_v45 = vpack.i.bf16 %v3635_v40, %v3624_v27  ;;  %2801 = vmatmul.mubr.msk.f32.vlgmr.msra.gmra.mrb[0].mxu0 %vm452_vm0, %v3635_v40  ;;  %v511_v46 = vmax.f32 %v485_v1, 1e-24  ;;  %v512_v2 = vmax.f32 %v488_v41, 1e-24 }
  0xc9   : > { %v3091_v47 = vpop.eup %3090  ;;  %2803 = vmatprep.mubr.msk.f32.mxu0 %vm452_vm0, %v3627_v32  ;;  %v3646_v6 = vmul.f32 %v3089_v42, %v3518_v8 }
  0xca   : > { %3100 = vrsqrt.f32 %v511_v46  ;;  %v3649_v48 = vmul.f32 %v3091_v47, %v3521_v9 }
  0xcb   : > { %3102 = vrsqrt.f32 %v512_v2  ;;  %v491_v49 = vpop.xlane.xlu0 %490  ;;  %v494_v50 = vpop.xlane.xlu1 %493 }
  0xcc   : > { %v3093_v51 = vpop.eup %3092  ;;  %2804 = vmatmul.mubr.msk.f32.gmra.mrb[2].mxu0 %vm452_vm0, %v3632_v39  ;;  %v513_v52 = vmax.f32 %v491_v49, 1e-24  ;;  %v514_v53 = vmax.f32 %v494_v50, 1e-24  ;;  %v3010_v54 = vpack.i.bf16 %v3649_v48, %v3646_v6  ;;  %v1106_v39 = vld [vmem:[%s3893_s12] sm:$0xff] }
  0xcd   : > { %v3095_v55 = vpop.eup %3094  ;;  %2806 = vmatprep.mubr.msk.f32.mxu0 %vm452_vm0, %v3646_v6  ;;  %v3658_v8 = vmul.f32 %v3093_v51, %v3532_v16 }
  0xce   : > { %3104 = vrsqrt.f32 %v513_v52  ;;  %v3661_v9 = vmul.f32 %v3095_v55, %v3535_v17 }
  0xcf   : > { %3106 = vrsqrt.f32 %v514_v53  ;;  %v497_v56 = vpop.xlane.xlu0 %496  ;;  %v500_v57 = vpop.xlane.xlu1 %499 }
  0xd0   : > { %v3097_v58 = vpop.eup %3096  ;;  %2807 = vmatmul.mubr.msk.f32.gmra.mrb[4].mxu0 %vm452_vm0, %v3649_v48  ;;  %v515_v59 = vmax.f32 %v497_v56, 1e-24  ;;  %v516_v60 = vmax.f32 %v500_v57, 1e-24  ;;  %v3015_v61 = vpack.i.bf16 %v3661_v9, %v3658_v8 }
  0xd1   : > { %v3099_v62 = vpop.eup %3098  ;;  %2809 = vmatprep.mubr.msk.f32.mxu0 %vm452_vm0, %v3658_v8  ;;  %v3670_v16 = vmul.f32 %v3097_v58, %v3544_v22 }
  0xd2   : > { %3108 = vrsqrt.f32 %v515_v59  ;;  %v3673_v17 = vmul.f32 %v3099_v62, %v3547_v23 }
  0xd3   : > { %3110 = vrsqrt.f32 %v516_v60 }
  0xd4   : > { %v3101_v63 = vpop.eup %3100  ;;  %2810 = vmatmul.mubr.msk.f32.gmra.mrb[6].mxu0 %vm452_vm0, %v3661_v9  ;;  %v3020_v3 = vpack.i.bf16 %v3673_v17, %v3670_v16 }
  0xd5   : > { %v3103_v4 = vpop.eup %3102  ;;  %2812 = vmatprep.mubr.msk.f32.mxu0 %vm452_vm0, %v3670_v16  ;;  %v3682_v5 = vmul.f32 %v3101_v63, %v3556_v28  ;;  %v1109_v16 = vld [vmem:[%s3893_s12 + $0x18] sm:$0xff] }
  0xd6   : > { %v3685_v22 = vmul.f32 %v3103_v4, %v3559_v29 }
  0xd8   : > { %v3105_v23 = vpop.eup %3104  ;;  %2813 = vmatmul.mubr.msk.f32.gmra.mrb[8].mxu0 %vm452_vm0, %v3673_v17  ;;  %v3025_v7 = vpack.i.bf16 %v3685_v22, %v3682_v5 }
  0xd9   : > { %v3107_v10 = vpop.eup %3106  ;;  %2815 = vmatprep.mubr.msk.f32.mxu0 %vm452_vm0, %v3682_v5  ;;  %v3694_v11 = vmul.f32 %v3105_v23, %v3568_v34 }
  0xda   : > { %v3697_v28 = vmul.f32 %v3107_v10, %v3571_v35 }
  0xdb   : > { %4824 = vst [vmem:[#allocation8_spill] sm:$0xff] %v3694_v11 }
  0xdc   : > { %4825 = vst [vmem:[#allocation9_spill] sm:$0xff] %v3697_v28  ;;  %v3109_v12 = vpop.eup %3108  ;;  %2816 = vmatmul.mubr.msk.f32.gmra.mrb[10].mxu0 %vm452_vm0, %v3685_v22 }
  0xdd   : > { %v3111_v13 = vpop.eup %3110  ;;  %2818 = vmatprep.mubr.msk.f32.mxu0 %vm452_vm0, %v3694_v11  ;;  %v3706_v14 = vmul.f32 %v3109_v12, %v3586_v43  ;;  %v775_v43 = vld [vmem:[%s4792_s4 + $0x10] sm:$0xff] }
  0xde   : > { %v3709_v34 = vmul.f32 %v3111_v13, %v3589_v44  ;;  %v776_v44 = vld [vmem:[%s4792_s4 + $0x18] sm:$0xff] }
  0xdf   : > { %4826 = vst [vmem:[#allocation10_spill] sm:$0xff] %v3706_v14  ;;  %v2934_v15 = vpack.c.bf16 %v776_v44, %v775_v43 }
  0xe0   : > { %4827 = vst [vmem:[#allocation11_spill] sm:$0xff] %v3709_v34  ;;  %2819 = vmatmul.mubr.msk.f32.gmra.mrb[12].mxu0 %vm452_vm0, %v3697_v28 }
  0xe1   : > { %2821 = vmatprep.mubr.msk.f32.mxu0 %vm452_vm0, %v3706_v14  ;;  %2935 = vmatprep.subr.bf16.mxu1 %v2934_v15 }
  0xe2   : > { %2937 = vmatpush3.bf16.msra.mxu1 %v2934_v15 }
  0xe4   : > { %2822 = vmatmul.mubr.msk.f32.gmra.mrb[14].mxu0 %vm452_vm0, %v3709_v34 }
 0x19b   : > { %v2802_v19 = vpop.f32.mrb[0].mxu0 }
 0x19c   : > { %v684_v20 = vadd.f32 %v2802_v19, %v2578_v18  ;;  %v678_v21 = vpop.f32.mrb[1].mxu0 }
 0x19d   : > { %v679_v24 = vadd.f32 %v2578_v18, %v678_v21 }
 0x19e   : > { %v758_v30 = vmax.f32 %v684_v20, 0.0 }
 0x19f   : > { %v757_v25 = vmax.f32 %v679_v24, 0.0  ;;  %v2805_v26 = vpop.f32.mrb[2].mxu0 }
 0x1a0   : > { %v694_v31 = vadd.f32 %v2805_v26, %v2578_v18  ;;  %v688_v33 = vpop.f32.mrb[3].mxu0 }
 0x1a1   : > { %v689_v36 = vadd.f32 %v2578_v18, %v688_v33  ;;  %2832 = vmatprep.mubr.msk.f32.mxu1 %vm784_vm1, %v757_v25 }
 0x1a2   : > { %2833 = vmatmul.mubr.msk.f32.vlgmr.msra.gmra.mrb[0].mxu1 %vm784_vm1, %v758_v30  ;;  %v760_v1 = vmax.f32 %v694_v31, 0.0 }
 0x1a3   : > { %v759_v37 = vmax.f32 %v689_v36, 0.0  ;;  %v2808_v38 = vpop.f32.mrb[4].mxu0  ;;  %v3747_v36 = vld [vmem:[%s4793_s5] ss:$0 sm:$0xff] }
 0x1a4   : > { %v704_v41 = vadd.f32 %v2808_v38, %v2578_v18  ;;  %v698_v42 = vpop.f32.mrb[5].mxu0 }
 0x1a5   : > { %v699_v46 = vadd.f32 %v2578_v18, %v698_v42  ;;  %2835 = vmatprep.mubr.msk.f32.mxu1 %vm784_vm1, %v759_v37 }
 0x1a6   : > { %v762_v2 = vmax.f32 %v704_v41, 0.0  ;;  %2836 = vmatmul.mubr.msk.f32.gmra.mrb[2].mxu1 %vm784_vm1, %v760_v1 }
 0x1a7   : > { %v761_v47 = vmax.f32 %v699_v46, 0.0  ;;  %v2811_v49 = vpop.f32.mrb[6].mxu0 }
 0x1a8   : > { %v714_v50 = vadd.f32 %v2811_v49, %v2578_v18  ;;  %v708_v51 = vpop.f32.mrb[7].mxu0 }
 0x1a9   : > { %v709_v52 = vadd.f32 %v2578_v18, %v708_v51  ;;  %2838 = vmatprep.mubr.msk.f32.mxu1 %vm784_vm1, %v761_v47 }
 0x1aa   : > { %v764_v53 = vmax.f32 %v714_v50, 0.0  ;;  %2839 = vmatmul.mubr.msk.f32.gmra.mrb[4].mxu1 %vm784_vm1, %v762_v2 }
 0x1ab   : > { %v763_v55 = vmax.f32 %v709_v52, 0.0  ;;  %v2814_v56 = vpop.f32.mrb[8].mxu0 }
 0x1ac   : > { %v724_v57 = vadd.f32 %v2814_v56, %v2578_v18  ;;  %v718_v58 = vpop.f32.mrb[9].mxu0  ;;  %v1138_v56 = vld [vmem:[%s4794_s6] sm:$0xff] }
 0x1ad   : > { %v719_v59 = vadd.f32 %v2578_v18, %v718_v58  ;;  %2841 = vmatprep.mubr.msk.f32.mxu1 %vm784_vm1, %v763_v55  ;;  %2856 = vmatprep.subr.mxu1 %v1138_v56 }
 0x1ae   : > { %v766_v60 = vmax.f32 %v724_v57, 0.0  ;;  %2842 = vmatmul.mubr.msk.f32.gmra.mrb[6].mxu1 %vm784_vm1, %v764_v53 }
 0x1af   : > { %v765_v62 = vmax.f32 %v719_v59, 0.0  ;;  %v2817_v63 = vpop.f32.mrb[10].mxu0  ;;  %2857 = vmatpush3.msra.mxu1 %v1138_v56 }
 0x1b0   : > { %v734_v4 = vadd.f32 %v2817_v63, %v2578_v18  ;;  %v728_v23 = vpop.f32.mrb[11].mxu0 }
 0x1b1   : > { %v729_v10 = vadd.f32 %v2578_v18, %v728_v23  ;;  %2844 = vmatprep.mubr.msk.f32.mxu1 %vm784_vm1, %v765_v62 }
 0x1b2   : > { %v768_v12 = vmax.f32 %v734_v4, 0.0  ;;  %2845 = vmatmul.mubr.msk.f32.gmra.mrb[8].mxu1 %vm784_vm1, %v766_v60 }
 0x1b3   : > { %v767_v13 = vmax.f32 %v729_v10, 0.0  ;;  %v2820_v43 = vpop.f32.mrb[12].mxu0 }
 0x1b4   : > { %v744_v44 = vadd.f32 %v2820_v43, %v2578_v18  ;;  %v738_v15 = vpop.f32.mrb[13].mxu0 }
 0x1b5   : > { %v739_v19 = vadd.f32 %v2578_v18, %v738_v15  ;;  %2847 = vmatprep.mubr.msk.f32.mxu1 %vm784_vm1, %v767_v13 }
 0x1b6   : > { %v770_v20 = vmax.f32 %v744_v44, 0.0  ;;  %2848 = vmatmul.mubr.msk.f32.gmra.mrb[10].mxu1 %vm784_vm1, %v768_v12 }
 0x1b7   : > { %v769_v21 = vmax.f32 %v739_v19, 0.0  ;;  %v2823_v24 = vpop.f32.mrb[14].mxu0 }
 0x1b8   : > { %v754_v25 = vadd.f32 %v2823_v24, %v2578_v18  ;;  %v748_v26 = vpop.f32.mrb[15].mxu0 }
 0x1b9   : > { %v749_v30 = vadd.f32 %v2578_v18, %v748_v26  ;;  %2850 = vmatprep.mubr.msk.f32.mxu1 %vm784_vm1, %v769_v21 }
 0x1ba   : > { %v772_v31 = vmax.f32 %v754_v25, 0.0  ;;  %2851 = vmatmul.mubr.msk.f32.gmra.mrb[12].mxu1 %vm784_vm1, %v770_v20 }
 0x1bb   : > { %v771_v33 = vmax.f32 %v749_v30, 0.0 }
 0x1bd   : > { %2853 = vmatprep.mubr.msk.f32.mxu1 %vm784_vm1, %v771_v33 }
 0x1be   : > { %2854 = vmatmul.mubr.msk.f32.gmra.mrb[14].mxu1 %vm784_vm1, %v772_v31 }
 0x275   : > { %v2834_v37 = vpop.f32.mrb[0].mxu1 }
 0x276   : > { %v3750_v38 = vadd.f32 %v2834_v37, %v3747_v36  ;;  %v899_v18 = vpop.f32.mrb[1].mxu1 }
 0x277   : > { %v3753_v1 = vadd.f32 %v3747_v36, %v899_v18 }
 0x278   : > { %v979_v41 = vmul.f32 0.5, %v3750_v38 }
 0x279   : > { %v978_v42 = vmul.f32 0.5, %v3753_v1  ;;  %v2837_v46 = vpop.f32.mrb[2].mxu1 }
 0x27a   : > { %v996_v2 = vmul.f32 1.442695, %v979_v41  ;;  %v3758_v47 = vadd.f32 %v2837_v46, %v3747_v36  ;;  %v909_v49 = vpop.f32.mrb[3].mxu1 }
 0x27b   : > { %v994_v50 = vmul.f32 1.442695, %v978_v42  ;;  %v3761_v51 = vadd.f32 %v3747_v36, %v909_v49 }
 0x27c   : > { %3112 = vpow2.f32 %v996_v2  ;;  %v981_v52 = vmul.f32 0.5, %v3758_v47 }
 0x27d   : > { %3114 = vpow2.f32 %v994_v50  ;;  %v980_v53 = vmul.f32 0.5, %v3761_v51  ;;  %v2840_v55 = vpop.f32.mrb[4].mxu1 }
 0x27e   : > { %v3769_v57 = vadd.f32 %v2840_v55, %v3747_v36  ;;  %v919_v58 = vpop.f32.mrb[5].mxu1  ;;  %v1000_v62 = vmul.f32 1.442695, %v981_v52 }
 0x27f   : > { %v998_v59 = vmul.f32 1.442695, %v980_v53  ;;  %v3772_v60 = vadd.f32 %v3747_v36, %v919_v58 }
 0x280   : > { %v983_v63 = vmul.f32 0.5, %v3769_v57 }
 0x281   : > { %3116 = vpow2.f32 %v998_v59  ;;  %v982_v4 = vmul.f32 0.5, %v3772_v60  ;;  %v2843_v23 = vpop.f32.mrb[6].mxu1 }
 0x282   : > { %v3777_v10 = vadd.f32 %v2843_v23, %v3747_v36  ;;  %v929_v12 = vpop.f32.mrb[7].mxu1  ;;  %3118 = vpow2.f32 %v1000_v62  ;;  %v1004_v44 = vmul.f32 1.442695, %v983_v63 }
 0x283   : > { %v1002_v13 = vmul.f32 1.442695, %v982_v4  ;;  %v3780_v43 = vadd.f32 %v3747_v36, %v929_v12 }
 0x284   : > { %v985_v15 = vmul.f32 0.5, %v3777_v10 }
 0x285   : > { %3120 = vpow2.f32 %v1002_v13  ;;  %v984_v19 = vmul.f32 0.5, %v3780_v43  ;;  %v2846_v20 = vpop.f32.mrb[8].mxu1 }
 0x286   : > { %v3113_v21 = vpop.eup %3112  ;;  %v3785_v24 = vadd.f32 %v2846_v20, %v3747_v36  ;;  %v939_v25 = vpop.f32.mrb[9].mxu1  ;;  %3122 = vpow2.f32 %v1004_v44  ;;  %v1008_v33 = vmul.f32 1.442695, %v985_v15 }
 0x287   : > { %v3115_v26 = vpop.eup %3114  ;;  %v1006_v30 = vmul.f32 1.442695, %v984_v19  ;;  %v3788_v31 = vadd.f32 %v3747_v36, %v939_v25  ;;  %1044 = vrot.lane.b32.xlu1 %v3113_v21, %s3368_s16 }
 0x288   : > { %v987_v37 = vmul.f32 0.5, %v3785_v24  ;;  %1042 = vrot.lane.b32.xlu0 %v3115_v26, %s3368_s16 }
 0x289   : > { %3124 = vpow2.f32 %v1006_v30  ;;  %v986_v18 = vmul.f32 0.5, %v3788_v31  ;;  %v2849_v41 = vpop.f32.mrb[10].mxu1 }
 0x28a   : > { %v3795_v42 = vadd.f32 %v2849_v41, %v3747_v36  ;;  %v949_v46 = vpop.f32.mrb[11].mxu1  ;;  %3126 = vpow2.f32 %v1008_v33  ;;  %v1012_v52 = vmul.f32 1.442695, %v987_v37 }
 0x28b   : > { %v3117_v2 = vpop.eup %3116  ;;  %v1010_v49 = vmul.f32 1.442695, %v986_v18  ;;  %v3798_v50 = vadd.f32 %v3747_v36, %v949_v46 }
 0x28c   : > { %v989_v53 = vmul.f32 0.5, %v3795_v42  ;;  %1046 = vrot.lane.b32.xlu1 %v3117_v2, %s3368_s16  ;;  %v3119_v58 = vpop.eup %3118 }
 0x28d   : > { %3128 = vpow2.f32 %v1010_v49  ;;  %v988_v55 = vmul.f32 0.5, %v3798_v50  ;;  %v2852_v56 = vpop.f32.mrb[12].mxu1 }
 0x28e   : > { %v3804_v59 = vadd.f32 %v2852_v56, %v3747_v36  ;;  %v959_v62 = vpop.f32.mrb[13].mxu1  ;;  %3130 = vpow2.f32 %v1012_v52  ;;  %v1016_v12 = vmul.f32 1.442695, %v989_v53 }
 0x28f   : > { %v3121_v63 = vpop.eup %3120  ;;  %v1014_v4 = vmul.f32 1.442695, %v988_v55  ;;  %v3807_v23 = vadd.f32 %v3747_v36, %v959_v62 }
 0x290   : > { %v991_v13 = vmul.f32 0.5, %v3804_v59  ;;  %1048 = vrot.lane.b32.xlu1 %v3119_v58, %s3368_s16  ;;  %1050 = vrot.lane.b32.xlu0 %v3121_v63, %s3368_s16  ;;  %v3123_v19 = vpop.eup %3122 }
 0x291   : > { %3132 = vpow2.f32 %v1014_v4  ;;  %v990_v44 = vmul.f32 0.5, %v3807_v23  ;;  %v2855_v15 = vpop.f32.mrb[14].mxu1 }
 0x292   : > { %v3814_v20 = vadd.f32 %v2855_v15, %v3747_v36  ;;  %v969_v21 = vpop.f32.mrb[15].mxu1  ;;  %3134 = vpow2.f32 %v1016_v12  ;;  %v1020_v33 = vmul.f32 1.442695, %v991_v13  ;;  %v1111_v12 = vld [vmem:[%s3893_s12 + $0x28] sm:$0xff] }
 0x293   : > { %v3125_v25 = vpop.eup %3124  ;;  %v1018_v26 = vmul.f32 1.442695, %v990_v44  ;;  %v3817_v30 = vadd.f32 %v3747_v36, %v969_v21  ;;  %v1112_v44 = vld [vmem:[%s3893_s12 + $0x30] sm:$0xff] }
 0x294   : > { %1052 = vrot.lane.b32.xlu1 %v3123_v19, %s3368_s16  ;;  %1054 = vrot.lane.b32.xlu0 %v3125_v25, %s3368_s16  ;;  %v993_v37 = vmul.f32 0.5, %v3814_v20  ;;  %v3127_v41 = vpop.eup %3126 }
 0x295   : > { %3136 = vpow2.f32 %v1018_v26  ;;  %v992_v18 = vmul.f32 0.5, %v3817_v30 }
 0x296   : > { %3138 = vpow2.f32 %v1020_v33  ;;  %v1024_v36 = vmul.f32 1.442695, %v993_v37  ;;  %v1113_v33 = vld [vmem:[%s3893_s12 + $0x38] sm:$0xff] }
 0x297   : > { %v3129_v46 = vpop.eup %3128  ;;  %v1022_v2 = vmul.f32 1.442695, %v992_v18  ;;  %v1114_v18 = vld [vmem:[%s3893_s12 + $0x40] sm:$0xff] }
 0x298   : > { %1056 = vrot.lane.b32.xlu1 %v3127_v41, %s3368_s16  ;;  %1058 = vrot.lane.b32.xlu0 %v3129_v46, %s3368_s16  ;;  %v3131_v49 = vpop.eup %3130 }
 0x299   : > { %3140 = vpow2.f32 %v1022_v2 }
 0x29a   : > { %3142 = vpow2.f32 %v1024_v36  ;;  %v1576_v36 = vmul.f32 1.442695, %v3753_v1 }
 0x29b   : > { %v3133_v52 = vpop.eup %3132 }
 0x29c   : > { %1060 = vrot.lane.b32.xlu1 %v3131_v49, %s3368_s16  ;;  %1062 = vrot.lane.b32.xlu0 %v3133_v52, %s3368_s16  ;;  %v3135_v53 = vpop.eup %3134  ;;  %3144 = vpow2.f32 %v1576_v36 }
 0x29f   : > { %v3137_v55 = vpop.eup %3136 }
 0x2a0   : > { %1064 = vrot.lane.b32.xlu1 %v3135_v53, %s3368_s16  ;;  %1066 = vrot.lane.b32.xlu0 %v3137_v55, %s3368_s16  ;;  %v3139_v56 = vpop.eup %3138  ;;  %v1115_v53 = vld [vmem:[%s3893_s12 + $0x48] sm:$0xff] }
 0x2a3   : > { %v3141_v58 = vpop.eup %3140 }
 0x2a4   : > { %1068 = vrot.lane.b32.xlu1 %v3139_v56, %s3368_s16  ;;  %1070 = vrot.lane.b32.xlu0 %v3141_v58, %s3368_s16  ;;  %v3143_v62 = vpop.eup %3142  ;;  %v1116_v56 = vld [vmem:[%s3893_s12 + $0x50] sm:$0xff] }
 0x2a8   : > { %1072 = vrot.lane.b32.xlu1 %v3143_v62, %s3368_s16  ;;  %1624 = vrot.lane.b32.xlu0 %v3753_v1, %s4816_s22 }
 0x2ac   : > { %1626 = vrot.lane.b32.xlu1 %v3750_v38, %s4816_s22  ;;  %1628 = vrot.lane.b32.xlu0 %v3761_v51, %s4816_s22 }
 0x2b0   : > { %1630 = vrot.lane.b32.xlu1 %v3758_v47, %s4816_s22  ;;  %1632 = vrot.lane.b32.xlu0 %v3772_v60, %s4816_s22 }
 0x2b4   : > { %1634 = vrot.lane.b32.xlu1 %v3769_v57, %s4816_s22  ;;  %1636 = vrot.lane.b32.xlu0 %v3780_v43, %s4816_s22 }
 0x2b8   : > { %1638 = vrot.lane.b32.xlu1 %v3777_v10, %s4816_s22  ;;  %1640 = vrot.lane.b32.xlu0 %v3788_v31, %s4816_s22 }
 0x2bc   : > { %1642 = vrot.lane.b32.xlu1 %v3785_v24, %s4816_s22  ;;  %1644 = vrot.lane.b32.xlu0 %v3798_v50, %s4816_s22 }
 0x2c0   : > { %1646 = vrot.lane.b32.xlu1 %v3795_v42, %s4816_s22  ;;  %1648 = vrot.lane.b32.xlu0 %v3807_v23, %s4816_s22 }
 0x2c4   : > { %1650 = vrot.lane.b32.xlu1 %v3804_v59, %s4816_s22  ;;  %1652 = vrot.lane.b32.xlu0 %v3817_v30, %s4816_s22 }
 0x2c8   : > { %1654 = vrot.lane.b32.xlu1 %v3814_v20, %s4816_s22  ;;  %3006 = vrot.lane.b32.xlu0 %v3005_v0, %s3370_s15  ;;  %v1107_v0 = vld [vmem:[%s3893_s12 + $0x8] sm:$0xff] }
 0x2cc   : > { %3001 = vrot.lane.b32.xlu1 %v3000_v45, %s3370_s15  ;;  %3016 = vrot.lane.b32.xlu0 %v3015_v61, %s3370_s15 }
 0x2d0   : > { %3011 = vrot.lane.b32.xlu1 %v3010_v54, %s3370_s15  ;;  %3026 = vrot.lane.b32.xlu0 %v3025_v7, %s3370_s15  ;;  %v1108_v54 = vld [vmem:[%s3893_s12 + $0x10] sm:$0xff] }
 0x2d4   : > { %3021 = vrot.lane.b32.xlu1 %v3020_v3, %s3370_s15  ;;  %v1110_v3 = vld [vmem:[%s3893_s12 + $0x20] sm:$0xff] }
 0x2f9   : > { %v1045_v27 = vpop.permute.xlu1 %1044 }
 0x2fa   : > { %v3896_v32 = vmul.f32 %v1045_v27, %v3750_v38  ;;  %v1043_v40 = vpop.permute.xlu0 %1042 }
 0x2fb   : > { %v3901_v45 = vmul.f32 %v1043_v40, %v3753_v1  ;;  %v1580_v40 = vmul.f32 1.442695, %v3761_v51 }
 0x2fc   : > { %v3907_v48 = vadd.f32 %v1107_v0, %v3896_v32 }
 0x2fd   : > { %v3904_v6 = vadd.f32 %v1106_v39, %v3901_v45  ;;  %v1578_v39 = vmul.f32 1.442695, %v3750_v38 }
 0x2fe   : > { %v1047_v8 = vpop.permute.xlu1 %1046 }
 0x2ff   : > { %4830 = vst [vmem:[#allocation12_spill] sm:$0xff] %v3904_v6  ;;  %v3911_v9 = vmul.f32 %v1047_v8, %v3761_v51  ;;  %2858 = vmatprep.mubr.msk.f32.mxu1 %vm1146_vm2, %v3904_v6  ;;  %v1117_v8 = vld [vmem:[%s3893_s12 + $0x58] sm:$0xff]  ;;  %3146 = vpow2.f32 %v1578_v39 }
 0x300   : > { %2859 = vmatmul.mubr.msk.f32.vlgmr.msra.gmra.mrb[16].mxu1 %vm1146_vm2, %v3907_v48  ;;  %3148 = vpow2.f32 %v1580_v40 }
 0x301   : > { %v3918_v61 = vadd.f32 %v1108_v54, %v3911_v9 }
 0x302   : > { %v1049_v17 = vpop.permute.xlu1 %1048  ;;  %v1051_v5 = vpop.permute.xlu0 %1050 }
 0x303   : > { %v3923_v22 = vmul.f32 %v1049_v17, %v3758_v47  ;;  %v3926_v7 = vmul.f32 %v1051_v5, %v3772_v60  ;;  %2861 = vmatprep.mubr.msk.f32.mxu1 %vm1146_vm2, %v3918_v61  ;;  %v1118_v17 = vld [vmem:[%s3893_s12 + $0x60] sm:$0xff] }
 0x305   : > { %v3931_v63 = vadd.f32 %v1109_v16, %v3923_v22  ;;  %v3934_v4 = vadd.f32 %v1110_v3, %v3926_v7 }
 0x306   : > { %v1053_v13 = vpop.permute.xlu1 %1052  ;;  %v1055_v15 = vpop.permute.xlu0 %1054 }
 0x307   : > { %4831 = vst [vmem:[#allocation13_spill] sm:$0xff] %v3931_v63  ;;  %v3939_v19 = vmul.f32 %v1053_v13, %v3769_v57  ;;  %v3942_v21 = vmul.f32 %v1055_v15, %v3780_v43  ;;  %2862 = vmatmul.mubr.msk.f32.gmra.mrb[18].mxu1 %vm1146_vm2, %v3931_v63  ;;  %v1582_v13 = vmul.f32 1.442695, %v3758_v47 }
 0x308   : > { %2864 = vmatprep.mubr.msk.f32.mxu1 %vm1146_vm2, %v3934_v4 }
 0x309   : > { %v3949_v25 = vadd.f32 %v1111_v12, %v3939_v19  ;;  %v3952_v26 = vadd.f32 %v1112_v44, %v3942_v21  ;;  %v1584_v44 = vmul.f32 1.442695, %v3772_v60  ;;  %3150 = vpow2.f32 %v1582_v13 }
 0x30a   : > { %v1057_v37 = vpop.permute.xlu1 %1056  ;;  %v1059_v41 = vpop.permute.xlu0 %1058 }
 0x30b   : > { %v3957_v46 = vmul.f32 %v1057_v37, %v3777_v10  ;;  %v3960_v2 = vmul.f32 %v1059_v41, %v3788_v31  ;;  %2865 = vmatmul.mubr.msk.f32.gmra.mrb[20].mxu1 %vm1146_vm2, %v3949_v25  ;;  %v1119_v37 = vld [vmem:[%s3893_s12 + $0x68] sm:$0xff]  ;;  %v1120_v41 = vld [vmem:[%s3893_s12 + $0x70] sm:$0xff]  ;;  %3152 = vpow2.f32 %v1584_v44  ;;  %v1590_v44 = vmul.f32 1.442695, %v3777_v10 }
 0x30c   : > { %2867 = vmatprep.mubr.msk.f32.mxu1 %vm1146_vm2, %v3952_v26 }
 0x30d   : > { %v3968_v49 = vadd.f32 %v1113_v33, %v3957_v46  ;;  %v3971_v52 = vadd.f32 %v1114_v18, %v3960_v2 }
 0x30e   : > { %v1061_v55 = vpop.permute.xlu1 %1060  ;;  %v1063_v58 = vpop.permute.xlu0 %1062 }
 0x30f   : > { %4832 = vst [vmem:[#allocation14_spill] sm:$0xff] %v3971_v52  ;;  %v3976_v62 = vmul.f32 %v1061_v55, %v3785_v24  ;;  %v3979_v27 = vmul.f32 %v1063_v58, %v3798_v50  ;;  %2868 = vmatmul.mubr.msk.f32.gmra.mrb[22].mxu1 %vm1146_vm2, %v3968_v49  ;;  %v1588_v58 = vmul.f32 1.442695, %v3780_v43 }
 0x310   : > { %2870 = vmatprep.mubr.msk.f32.mxu1 %vm1146_vm2, %v3971_v52 }
 0x311   : > { %v3988_v0 = vadd.f32 %v1115_v53, %v3976_v62  ;;  %v3991_v54 = vadd.f32 %v1116_v56, %v3979_v27  ;;  %v1586_v56 = vmul.f32 1.442695, %v3769_v57 }
 0x312   : > { %v1065_v16 = vpop.permute.xlu1 %1064  ;;  %v1067_v3 = vpop.permute.xlu0 %1066 }
 0x313   : > { %4833 = vst [vmem:[#allocation15_spill] sm:$0xff] %v3991_v54  ;;  %v3996_v5 = vmul.f32 %v1065_v16, %v3795_v42  ;;  %v3999_v12 = vmul.f32 %v1067_v3, %v3807_v23  ;;  %2871 = vmatmul.mubr.msk.f32.gmra.mrb[24].mxu1 %vm1146_vm2, %v3988_v0  ;;  %v1121_v16 = vld [vmem:[%s3893_s12 + $0x78] sm:$0xff]  ;;  %3154 = vpow2.f32 %v1586_v56  ;;  %s4499_s12 = sand.u32 1, %s3358_s18  }
 0x314   : > { %2873 = vmatprep.mubr.msk.f32.mxu1 %vm1146_vm2, %v3991_v54  ;;  %3156 = vpow2.f32 %v1588_v58  ;;  %s406_s30 = scalar_lea.vmem [#allocation4], %s4499_s12 }
 0x315   : > { %v4008_v15 = vadd.f32 %v1117_v8, %v3996_v5  ;;  %v4011_v33 = vadd.f32 %v1118_v17, %v3999_v12  ;;  %v3145_v8 = vpop.eup %3144  ;;  %3158 = vpow2.f32 %v1590_v44  ;;  %s2470_s14 = sshll.u32 %s406_s30, 4  ;;  %s4502_s14 = int_to_ptr.vmem [resolvable:$true] %s2470_s14 }
 0x316   : > { %v1069_v18 = vpop.permute.xlu1 %1068  ;;  %v1071_v36 = vpop.permute.xlu0 %1070  ;;  %p3279_p0 = scmp.lt.s32.totalorder %s4502_s14, %s3277_s1 }
 0x317   : > { %4834 = vst [vmem:[#allocation16_spill] sm:$0xff] %v4008_v15  ;;  %4835 = vst [vmem:[#allocation17_spill] sm:$0xff] %v4011_v33  ;;  %v4016_v53 = vmul.f32 %v1069_v18, %v3804_v59  ;;  %v4019_v55 = vmul.f32 %v1071_v36, %v3817_v30  ;;  %2874 = vmatmul.mubr.msk.f32.gmra.mrb[26].mxu1 %vm1146_vm2, %v4008_v15 }
 0x318   : > { %2876 = vmatprep.mubr.msk.f32.mxu1 %vm1146_vm2, %v4011_v33 }
 0x319   : > { %v4028_v39 = vadd.f32 %v1119_v37, %v4016_v53  ;;  %v4031_v40 = vadd.f32 %v1120_v41, %v4019_v55  ;;  %v3147_v37 = vpop.eup %3146 }
 0x31a   : > { %v1073_v17 = vpop.permute.xlu1 %1072  ;;  %v1625_v3 = vpop.permute.xlu0 %1624 }
 0x31b   : > { %4836 = vst [vmem:[#allocation18_spill] sm:$0xff] %v4028_v39  ;;  %4837 = vst [vmem:[#allocation19_spill] sm:$0xff] %v4031_v40  ;;  %v4035_v13 = vmul.f32 %v1073_v17, %v3814_v20  ;;  %v1672_v18 = vadd.f32 %v3145_v8, %v1625_v3  ;;  %2877 = vmatmul.mubr.msk.f32.gmra.mrb[28].mxu1 %vm1146_vm2, %v4028_v39  ;;  %v3149_v29 = vpop.eup %3148 }
 0x31c   : > { %2879 = vmatprep.mubr.msk.f32.mxu1 %vm1146_vm2, %v4031_v40  ;;  %v3151_v56 = vpop.eup %3150 }
 0x31d   : > { %v4043_v41 = vadd.f32 %v1121_v16, %v4035_v13  ;;  %v1688_v36 = vsub.f32 %v1672_v18, %v3753_v1  ;;  %v3153_v16 = vpop.eup %3152 }
 0x31e   : > { %v1627_v17 = vpop.permute.xlu1 %1626  ;;  %v1629_v35 = vpop.permute.xlu0 %1628 }
 0x31f   : > { %4838 = vst [vmem:[#allocation20_spill] sm:$0xff] %v4043_v41  ;;  %v2646_v8 = vadd.f32 -1.0, %v1688_v36  ;;  %v1673_v3 = vadd.f32 %v3147_v37, %v1627_v17  ;;  %v1674_v11 = vadd.f32 %v3149_v29, %v1629_v35  ;;  %2880 = vmatmul.mubr.msk.f32.gmra.mrb[30].mxu1 %vm1146_vm2, %v4043_v41  ;;  %v3155_v37 = vpop.eup %3154 }
 0x321   : > { %v1689_v58 = vsub.f32 %v1673_v3, %v3750_v38  ;;  %v1690_v28 = vsub.f32 %v1674_v11, %v3761_v51  ;;  %1736 = vrot.lane.b32.xlu0 %v2646_v8, %s3368_s16  ;;  %v3157_v38 = vpop.eup %3156 }
 0x322   : > { %v1631_v14 = vpop.permute.xlu1 %1630  ;;  %v1633_v1 = vpop.permute.xlu0 %1632 }
 0x323   : > { %v2647_v18 = vadd.f32 -1.0, %v1689_v58  ;;  %v2648_v34 = vadd.f32 -1.0, %v1690_v28  ;;  %v1675_v40 = vadd.f32 %v3151_v56, %v1631_v14  ;;  %v1676_v36 = vadd.f32 %v3153_v16, %v1633_v1  ;;  %v1357_v1 = vld [vmem:[%s4796_s8 + $0x8] sm:$0xff] }
 0x325   : > { %v1691_v29 = vsub.f32 %v1675_v40, %v3758_v47  ;;  %v1692_v35 = vsub.f32 %v1676_v36, %v3772_v60  ;;  %1738 = vrot.lane.b32.xlu1 %v2647_v18, %s3368_s16  ;;  %1740 = vrot.lane.b32.xlu0 %v2648_v34, %s3368_s16  ;;  %v3159_v47 = vpop.eup %3158  ;;  %v1939_v36 = vmul.f32 %v3907_v48, %v3907_v48 }
 0x326   : > { %v1635_v11 = vpop.permute.xlu1 %1634  ;;  %v1637_v51 = vpop.permute.xlu0 %1636 }
 0x327   : > { %v2649_v44 = vadd.f32 -1.0, %v1691_v29  ;;  %v2650_v17 = vadd.f32 -1.0, %v1692_v35  ;;  %v1677_v8 = vadd.f32 %v3155_v37, %v1635_v11  ;;  %v1678_v3 = vadd.f32 %v3157_v38, %v1637_v51  ;;  %v1358_v51 = vld [vmem:[%s4796_s8 + $0x10] sm:$0xff] }
 0x328   : > { %v1592_v37 = vmul.f32 1.442695, %v3788_v31  ;;  %v1594_v29 = vmul.f32 1.442695, %v3785_v24  ;;  %v1957_v35 = vsel %vm1146_vm2, %v1939_v36, 0.0  ;;  %v2050_v38 = vmul.f32 %v3901_v45, %v3901_v45 }
 0x329   : > { %v1693_v28 = vsub.f32 %v1677_v8, %v3769_v57  ;;  %v1694_v14 = vsub.f32 %v1678_v3, %v3780_v43  ;;  %1742 = vrot.lane.b32.xlu1 %v2649_v44, %s3368_s16  ;;  %1744 = vrot.lane.b32.xlu0 %v2650_v17, %s3368_s16  ;;  %v2051_v57 = vmul.f32 %v3896_v32, %v3896_v32  ;;  %v1356_v43 = vld [vmem:[%s4796_s8] sm:$0xff]  ;;  %v1359_v44 = vld [vmem:[%s4796_s8 + $0x18] sm:$0xff] }
 0x32a   : > { %v1639_v60 = vpop.permute.xlu1 %1638  ;;  %v2938_v18 = vpack.c.bf16 %v1357_v1, %v1356_v43  ;;  %3160 = vpow2.f32 %v1592_v37  ;;  %v2066_v11 = vsel %vm1146_vm2, %v2050_v38, 0.0  ;;  %v2942_v17 = vpack.c.bf16 %v1359_v44, %v1358_v51  ;;  %v1641_v8 = vpop.permute.xlu0 %1640 }
 0x32b   : > { %v2651_v40 = vadd.f32 -1.0, %v1693_v28  ;;  %v2652_v56 = vadd.f32 -1.0, %v1694_v14  ;;  %v1679_v34 = vadd.f32 %v3159_v47, %v1639_v60  ;;  %3162 = vpow2.f32 %v1594_v29 }
 0x32c   : > { %2939 = vmatprep.subr.bf16.mxu0 %v2938_v18  ;;  %2946 = vmatprep.subr.bf16.mxu1 %v2938_v18  ;;  %v1941_v37 = vmul.f32 %v3931_v63, %v3931_v63  ;;  %v1596_v29 = vmul.f32 1.442695, %v3798_v50  ;;  %v1598_v38 = vmul.f32 1.442695, %v3795_v42 }
 0x32d   : > { %v1695_v58 = vsub.f32 %v1679_v34, %v3777_v10  ;;  %1746 = vrot.lane.b32.xlu1 %v2651_v40, %s3368_s16  ;;  %1748 = vrot.lane.b32.xlu0 %v2652_v56, %s3368_s16  ;;  %v2069_v10 = vsel %vm1146_vm2, %v2051_v57, 0.0 }
 0x32e   : > { %2941 = vmatpush3.bf16.msra.mxu0 %v2938_v18  ;;  %2948 = vmatpush3.bf16.msra.mxu1 %v2938_v18  ;;  %v1643_v3 = vpop.permute.xlu1 %1642  ;;  %v1963_v51 = vsel %vm1146_vm2, %v1941_v37, 0.0  ;;  %3164 = vpow2.f32 %v1596_v29 }
 0x32f   : > { %v2653_v16 = vadd.f32 -1.0, %v1695_v58  ;;  %2943 = vmatprep.subr.bf16.mxu0 %v2942_v17  ;;  %2947 = vmatprep.subr.bf16.mxu1 %v2942_v17  ;;  %3166 = vpow2.f32 %v1598_v38 }
 0x331   : > { %1750 = vrot.lane.b32.xlu1 %v2653_v16, %s3368_s16  ;;  %v1645_v16 = vpop.permute.xlu0 %1644 }
 0x332   : > { %2945 = vmatpush3.bf16.msra.mxu0 %v2942_v17  ;;  %2949 = vmatpush3.bf16.msra.mxu1 %v2942_v17  ;;  %v1647_v57 = vpop.permute.xlu1 %1646 }
 0x334   : > { %v3161_v28 = vpop.eup %3160 }
 0x335   : > { %v3163_v14 = vpop.eup %3162  ;;  %v1680_v47 = vadd.f32 %v3161_v28, %v1641_v8  ;;  %v4090_v43 = vpop.permute.xlu0 %1648  ;;  %v2052_v8 = vmul.f32 %v3911_v9, %v3911_v9 }
 0x336   : > { %v1681_v60 = vadd.f32 %v3163_v14, %v1643_v3  ;;  %v4092_v1 = vpop.permute.xlu1 %1650 }
 0x337   : > { %v1696_v40 = vsub.f32 %v1680_v47, %v3788_v31  ;;  %v2072_v28 = vsel %vm1146_vm2, %v2052_v8, 0.0 }
 0x338   : > { %v1697_v56 = vsub.f32 %v1681_v60, %v3785_v24  ;;  %v3165_v47 = vpop.eup %3164 }
 0x339   : > { %v2654_v34 = vadd.f32 -1.0, %v1696_v40  ;;  %v4094_v18 = vpop.permute.xlu0 %1652 }
 0x33a   : > { %v2655_v58 = vadd.f32 -1.0, %v1697_v56  ;;  %v4098_v31 = vpop.permute.xlu1 %1654  ;;  %v3167_v56 = vpop.eup %3166 }
 0x33d   : > { %v4100_v24 = vpop.permute.xlu0 %3006 }
 0x341   : > { %v4112_v44 = vpop.permute.xlu0 %3016 }
 0x345   : > { %v4120_v14 = vpop.permute.xlu0 %3026 }
 0x34c   : > { %2070 = vadd.xlane.f32.xlu0 %v2069_v10  ;;  %v2053_v10 = vmul.f32 %v3923_v22, %v3923_v22 }
 0x34e   : > { %v2075_v36 = vsel %vm1146_vm2, %v2053_v10, 0.0 }
 0x350   : > { %1958 = vadd.xlane.f32.xlu0 %v1957_v35  ;;  %v1938_v35 = vmul.f32 %v3904_v6, %v3904_v6 }
 0x352   : > { %v1954_v17 = vsel %vm1146_vm2, %v1938_v35, 0.0 }
 0x355   : > { %2067 = vadd.xlane.f32.xlu1 %v2066_v11  ;;  %v4109_v11 = vpop.permute.xlu1 %3001 }
 0x359   : > { %v4117_v3 = vpop.permute.xlu1 %3011 }
 0x35d   : > { %v4122_v60 = vpop.permute.xlu1 %3021 }
 0x35e   : > { %4839 = vst [vmem:[#allocation21_spill] sm:$0xff] %v4122_v60 }
 0x366   : > { %1754 = vrot.lane.b32.xlu1 %v2655_v58, %s3368_s16  ;;  %1752 = vrot.lane.b32.xlu0 %v2654_v34, %s3368_s16  ;;  %v1682_v34 = vadd.f32 %v3165_v47, %v1645_v16  ;;  %v1683_v58 = vadd.f32 %v3167_v56, %v1647_v57 }
 0x368   : > { %v1698_v35 = vsub.f32 %v1682_v34, %v3798_v50  ;;  %v1699_v38 = vsub.f32 %v1683_v58, %v3795_v42 }
 0x36a   : > { %v2656_v16 = vadd.f32 -1.0, %v1698_v35  ;;  %v2657_v57 = vadd.f32 -1.0, %v1699_v38  ;;  %v1943_v35 = vmul.f32 %v3949_v25, %v3949_v25  ;;  %v1600_v38 = vmul.f32 1.442695, %v3807_v23 }
 0x36c   : > { %3168 = vpow2.f32 %v1600_v38 }
 0x385   : > { %2076 = vadd.xlane.f32.xlu0 %v2075_v36 }
 0x389   : > { %1964 = vadd.xlane.f32.xlu0 %v1963_v51 }
 0x38a   : > { %1955 = vadd.xlane.f32.xlu1 %v1954_v17 }
 0x38e   : > { %2073 = vadd.xlane.f32.xlu1 %v2072_v28 }
 0x393   : > { %v1737_v40 = vpop.permute.xlu0 %1736 }
 0x394   : > { %v1784_v37 = vsel %vm1146_vm2, %v1737_v40, 0.0 }
 0x397   : > { %v1739_v10 = vpop.permute.xlu1 %1738  ;;  %v1741_v36 = vpop.permute.xlu0 %1740 }
 0x398   : > { %v1785_v29 = vsel %vm1146_vm2, %v1739_v10, 0.0  ;;  %v1787_v17 = vsel %vm1146_vm2, %v1741_v36, 0.0 }
 0x399   : > { %v1786_v51 = vadd.f32 %v1785_v29, %v1784_v37 }
 0x39b   : > { %v1788_v8 = vadd.f32 %v1787_v17, %v1786_v51  ;;  %v1743_v28 = vpop.permute.xlu1 %1742  ;;  %v1745_v6 = vpop.permute.xlu0 %1744  ;;  %v1602_v51 = vmul.f32 1.442695, %v3804_v59  ;;  %v1969_v17 = vsel %vm1146_vm2, %v1943_v35, 0.0 }
 0x39c   : > { %v1789_v63 = vsel %vm1146_vm2, %v1743_v28, 0.0  ;;  %v1791_v56 = vsel %vm1146_vm2, %v1745_v6, 0.0  ;;  %v2055_v6 = vmul.f32 %v3939_v19, %v3939_v19  ;;  %v2054_v28 = vmul.f32 %v3926_v7, %v3926_v7 }
 0x39d   : > { %v1790_v47 = vadd.f32 %v1789_v63, %v1788_v8  ;;  %3170 = vpow2.f32 %v1602_v51 }
 0x39e   : > { %v2081_v63 = vsel %vm1146_vm2, %v2055_v6, 0.0 }
 0x39f   : > { %v1792_v40 = vadd.f32 %v1791_v56, %v1790_v47  ;;  %v1747_v60 = vpop.permute.xlu1 %1746  ;;  %1758 = vrot.lane.b32.xlu1 %v2657_v57, %s3368_s16  ;;  %1756 = vrot.lane.b32.xlu0 %v2656_v16, %s3368_s16  ;;  %v1749_v42 = vpop.permute.xlu0 %1748  ;;  %v2078_v16 = vsel %vm1146_vm2, %v2054_v28, 0.0 }
 0x3a0   : > { %v1793_v50 = vsel %vm1146_vm2, %v1747_v60, 0.0  ;;  %v1795_v58 = vsel %vm1146_vm2, %v1749_v42, 0.0  ;;  %v1940_v60 = vmul.f32 %v3918_v61, %v3918_v61  ;;  %v3169_v57 = vpop.eup %3168  ;;  %v4157_v42 = vld [vmem:[%s4795_s7] ss:$0 sm:$0xff] }
 0x3a1   : > { %v1794_v34 = vadd.f32 %v1793_v50, %v1792_v40  ;;  %v1684_v56 = vadd.f32 %v3169_v57, %v4090_v43 }
 0x3a2   : > { %v1960_v8 = vsel %vm1146_vm2, %v1940_v60, 0.0 }
 0x3a3   : > { %v1796_v10 = vadd.f32 %v1795_v58, %v1794_v34  ;;  %v1751_v36 = vpop.permute.xlu1 %1750  ;;  %v1700_v50 = vsub.f32 %v1684_v56, %v3807_v23 }
 0x3a4   : > { %v1797_v37 = vsel %vm1146_vm2, %v1751_v36, 0.0 }
 0x3a5   : > { %v4136_v29 = vadd.f32 %v1797_v37, %v1796_v10  ;;  %v2658_v6 = vadd.f32 -1.0, %v1700_v50 }
 0x3a7   : > { %v3171_v47 = vpop.eup %3170 }
 0x3a8   : > { %v1685_v40 = vadd.f32 %v3171_v47, %v4092_v1 }
 0x3aa   : > { %v1701_v34 = vsub.f32 %v1685_v40, %v3804_v59 }
 0x3be   : > { %2082 = vadd.xlane.f32.xlu0 %v2081_v63  ;;  %v2659_v63 = vadd.f32 -1.0, %v1701_v34 }
 0x3c2   : > { %1970 = vadd.xlane.f32.xlu0 %v1969_v17 }
 0x3c3   : > { %1961 = vadd.xlane.f32.xlu1 %v1960_v8 }
 0x3c7   : > { %2079 = vadd.xlane.f32.xlu1 %v2078_v16 }
 0x3d3   : > { %v2860_v58 = vpop.f32.mrb[16].mxu1 }
 0x3d4   : > { %v1267_v10 = vadd.f32 %v2860_v58, %v4157_v42  ;;  %v1261_v36 = vpop.f32.mrb[17].mxu1 }
 0x3d5   : > { %v1262_v37 = vadd.f32 %v4157_v42, %v1261_v36 }
 0x3d6   : > { %v1341_v35 = vmax.f32 %v1267_v10, 0.0 }
 0x3d7   : > { %v1340_v43 = vmax.f32 %v1262_v37, 0.0 }
 0x3d8   : > { %1762 = vrot.lane.b32.xlu1 %v2659_v63, %s3368_s16  ;;  %1760 = vrot.lane.b32.xlu0 %v2658_v6, %s3368_s16 }
 0x3d9   : > { %2890 = vmatprep.mubr.msk.f32.mxu0 %vm784_vm1, %v1340_v43  ;;  %v2071_v1 = vpop.xlane.xlu0 %2070 }
 0x3da   : > { %v2863_v23 = vpop.f32.mrb[18].mxu1  ;;  %2891 = vmatmul.mubr.msk.f32.vlgmr.msra.gmra.mrb[16].mxu0 %vm784_vm1, %v1341_v35  ;;  %v2115_v17 = vmax.f32 %v2071_v1, 1e-24 }
 0x3db   : > { %v1277_v59 = vadd.f32 %v2863_v23, %v4157_v42  ;;  %v1271_v38 = vpop.f32.mrb[19].mxu1 }
 0x3dc   : > { %v1272_v60 = vadd.f32 %v4157_v42, %v1271_v38  ;;  %3172 = vrsqrt.f32 %v2115_v17 }
 0x3dd   : > { %v4169_v51 = vpop.xlane.xlu0 %1958  ;;  %v1343_v16 = vmax.f32 %v1277_v59, 0.0 }
 0x3de   : > { %v1342_v8 = vmax.f32 %v1272_v60, 0.0  ;;  %v2866_v28 = vpop.f32.mrb[20].mxu1 }
 0x3df   : > { %v1287_v57 = vadd.f32 %v2866_v28, %v4157_v42  ;;  %v1281_v47 = vpop.f32.mrb[21].mxu1 }
 0x3e0   : > { %v1282_v56 = vadd.f32 %v4157_v42, %v1281_v47  ;;  %2893 = vmatprep.mubr.msk.f32.mxu0 %vm784_vm1, %v1342_v8 }
 0x3e1   : > { %2894 = vmatmul.mubr.msk.f32.gmra.mrb[18].mxu0 %vm784_vm1, %v1343_v16  ;;  %v1753_v40 = vpop.permute.xlu0 %1752  ;;  %v1345_v10 = vmax.f32 %v1287_v57, 0.0 }
 0x3e2   : > { %v1344_v50 = vmax.f32 %v1282_v56, 0.0  ;;  %v2068_v34 = vpop.xlane.xlu1 %2067  ;;  %v2869_v58 = vpop.f32.mrb[22].mxu1  ;;  %v1799_v36 = vsel %vm1146_vm2, %v1753_v40, 0.0 }
 0x3e3   : > { %v2114_v37 = vmax.f32 %v2068_v34, 1e-24  ;;  %v1297_v6 = vadd.f32 %v2869_v58, %v4157_v42  ;;  %v1291_v63 = vpop.f32.mrb[23].mxu1  ;;  %v1800_v35 = vadd.f32 %v1799_v36, %v4136_v29 }
 0x3e4   : > { %v1292_v43 = vadd.f32 %v4157_v42, %v1291_v63  ;;  %2896 = vmatprep.mubr.msk.f32.mxu0 %vm784_vm1, %v1344_v50 }
 0x3e5   : > { %3174 = vrsqrt.f32 %v2114_v37  ;;  %2897 = vmatmul.mubr.msk.f32.gmra.mrb[20].mxu0 %vm784_vm1, %v1345_v10  ;;  %v1347_v38 = vmax.f32 %v1297_v6, 0.0 }
 0x3e6   : > { %v1346_v1 = vmax.f32 %v1292_v43, 0.0  ;;  %v1755_v23 = vpop.permute.xlu1 %1754  ;;  %v2872_v59 = vpop.f32.mrb[24].mxu1 }
 0x3e7   : > { %v1801_v60 = vsel %vm1146_vm2, %v1755_v23, 0.0  ;;  %v1307_v17 = vadd.f32 %v2872_v59, %v4157_v42  ;;  %v1301_v8 = vpop.f32.mrb[25].mxu1  ;;  %v3173_v50 = vpop.eup %3172 }
 0x3e8   : > { %v4183_v28 = vadd.f32 %v1801_v60, %v1800_v35  ;;  %v1302_v16 = vadd.f32 %v4157_v42, %v1301_v8  ;;  %2899 = vmatprep.mubr.msk.f32.mxu0 %vm784_vm1, %v1346_v1  ;;  %v4199_v1 = vmul.f32 %v3173_v50, %v3896_v32  ;;  %v1606_v50 = vmul.f32 1.442695, %v3814_v20 }
 0x3e9   : > { %2900 = vmatmul.mubr.msk.f32.gmra.mrb[22].mxu0 %vm784_vm1, %v1347_v38  ;;  %v1349_v29 = vmax.f32 %v1307_v17, 0.0  ;;  %v2057_v38 = vmul.f32 %v3957_v46, %v3957_v46 }
 0x3ea   : > { %v1348_v57 = vmax.f32 %v1302_v16, 0.0  ;;  %v2875_v47 = vpop.f32.mrb[26].mxu1 }
 0x3eb   : > { %v1317_v56 = vadd.f32 %v2875_v47, %v4157_v42  ;;  %v1311_v40 = vpop.f32.mrb[27].mxu1  ;;  %v1945_v47 = vmul.f32 %v3968_v49, %v3968_v49 }
 0x3ec   : > { %v1312_v34 = vadd.f32 %v4157_v42, %v1311_v40  ;;  %2902 = vmatprep.mubr.msk.f32.mxu0 %vm784_vm1, %v1348_v57  ;;  %v2087_v57 = vsel %vm1146_vm2, %v2057_v38, 0.0  ;;  %v1942_v40 = vmul.f32 %v3934_v4, %v3934_v4 }
 0x3ed   : > { %2903 = vmatmul.mubr.msk.f32.gmra.mrb[24].mxu0 %vm784_vm1, %v1349_v29  ;;  %v1351_v37 = vmax.f32 %v1317_v56, 0.0  ;;  %v1604_v29 = vmul.f32 1.442695, %v3817_v30 }
 0x3ee   : > { %v1350_v58 = vmax.f32 %v1312_v34, 0.0  ;;  %v2878_v10 = vpop.f32.mrb[28].mxu1  ;;  %v1966_v34 = vsel %vm1146_vm2, %v1942_v40, 0.0  ;;  %v2063_v40 = vmul.f32 %v4016_v53, %v4016_v53 }
 0x3ef   : > { %v3175_v36 = vpop.eup %3174  ;;  %v1327_v6 = vadd.f32 %v2878_v10, %v4157_v42  ;;  %v1321_v63 = vpop.f32.mrb[29].mxu1  ;;  %3176 = vpow2.f32 %v1604_v29  ;;  %v1946_v29 = vmul.f32 %v3971_v52, %v3971_v52 }
 0x3f0   : > { %v1322_v43 = vadd.f32 %v4157_v42, %v1321_v63  ;;  %2905 = vmatprep.mubr.msk.f32.mxu0 %vm784_vm1, %v1350_v58  ;;  %v4196_v35 = vmul.f32 %v3175_v36, %v3901_v45  ;;  %v2056_v58 = vmul.f32 %v3942_v21, %v3942_v21  ;;  %3178 = vpow2.f32 %v1606_v50 }
 0x3f1   : > { %2906 = vmatmul.mubr.msk.f32.gmra.mrb[26].mxu0 %vm784_vm1, %v1351_v37  ;;  %v1353_v17 = vmax.f32 %v1327_v6, 0.0  ;;  %v1978_v50 = vsel %vm1146_vm2, %v1946_v29, 0.0 }
 0x3f2   : > { %v1352_v23 = vmax.f32 %v1322_v43, 0.0  ;;  %v2881_v59 = vpop.f32.mrb[30].mxu1  ;;  %v3030_v60 = vpack.i.bf16 %v4199_v1, %v4196_v35  ;;  %v2084_v10 = vsel %vm1146_vm2, %v2056_v58, 0.0  ;;  %v1951_v58 = vmul.f32 %v4028_v39, %v4028_v39 }
 0x3f3   : > { %v1337_v8 = vadd.f32 %v2881_v59, %v4157_v42  ;;  %v1331_v16 = vpop.f32.mrb[31].mxu1 }
 0x3f4   : > { %v1332_v45 = vadd.f32 %v4157_v42, %v1331_v16  ;;  %2908 = vmatprep.mubr.msk.f32.mxu0 %vm784_vm1, %v1352_v23  ;;  %v1975_v42 = vsel %vm1146_vm2, %v1945_v47, 0.0 }
 0x3f5   : > { %2909 = vmatmul.mubr.msk.f32.gmra.mrb[28].mxu0 %vm784_vm1, %v1353_v17  ;;  %v1355_v56 = vmax.f32 %v1337_v8, 0.0  ;;  %v2059_v17 = vmul.f32 %v3976_v62, %v3976_v62 }
 0x3f6   : > { %v1354_v32 = vmax.f32 %v1332_v45, 0.0  ;;  %v2058_v45 = vmul.f32 %v3960_v2, %v3960_v2 }
 0x3f7   : > { %2088 = vadd.xlane.f32.xlu0 %v2087_v57  ;;  %v2093_v8 = vsel %vm1146_vm2, %v2059_v17, 0.0  ;;  %v1949_v57 = vmul.f32 %v4008_v15, %v4008_v15 }
 0x3f8   : > { %2911 = vmatprep.mubr.msk.f32.mxu1 %vm784_vm1, %v1354_v32  ;;  %v2090_v47 = vsel %vm1146_vm2, %v2058_v45, 0.0 }
 0x3f9   : > { %2912 = vmatmul.mubr.msk.f32.vlgmr.msra.gmra.mrb[32].mxu1 %vm784_vm1, %v1355_v56  ;;  %v3177_v36 = vpop.eup %3176  ;;  %v1987_v56 = vsel %vm1146_vm2, %v1949_v57, 0.0 }
 0x3fa   : > { %v3179_v37 = vpop.eup %3178  ;;  %v1686_v6 = vadd.f32 %v3177_v36, %v4094_v18  ;;  %v1947_v18 = vmul.f32 %v3988_v0, %v3988_v0 }
 0x3fb   : > { %1976 = vadd.xlane.f32.xlu0 %v1975_v42  ;;  %v1687_v63 = vadd.f32 %v3179_v37, %v4098_v31  ;;  %v2061_v31 = vmul.f32 %v3996_v5, %v3996_v5  ;;  %v2060_v42 = vmul.f32 %v3979_v27, %v3979_v27  ;;  %v1948_v37 = vmul.f32 %v3991_v54, %v3991_v54 }
 0x3fc   : > { %1967 = vadd.xlane.f32.xlu1 %v1966_v34  ;;  %v1702_v43 = vsub.f32 %v1686_v6, %v3817_v30  ;;  %v1944_v30 = vmul.f32 %v3952_v26, %v3952_v26  ;;  %v2105_v34 = vsel %vm1146_vm2, %v2063_v40, 0.0  ;;  %v4840_v40 = vld [vmem:[#allocation19_spill] sm:$0xff] }
 0x3fd   : > { %v1703_v23 = vsub.f32 %v1687_v63, %v3814_v20  ;;  %v1981_v20 = vsel %vm1146_vm2, %v1947_v18, 0.0  ;;  %v2099_v32 = vsel %vm1146_vm2, %v2061_v31, 0.0  ;;  %v2096_v36 = vsel %vm1146_vm2, %v2060_v42, 0.0 }
 0x3fe   : > { %v2660_v59 = vadd.f32 -1.0, %v1702_v43  ;;  %v1972_v16 = vsel %vm1146_vm2, %v1944_v30, 0.0  ;;  %v1993_v63 = vsel %vm1146_vm2, %v1951_v58, 0.0  ;;  %v2065_v43 = vmul.f32 %v4035_v13, %v4035_v13 }
 0x3ff   : > { %v2661_v38 = vadd.f32 -1.0, %v1703_v23  ;;  %v1984_v23 = vsel %vm1146_vm2, %v1948_v37, 0.0 }
 0x400   : > { %2085 = vadd.xlane.f32.xlu1 %v2084_v10  ;;  %v2111_v17 = vsel %vm1146_vm2, %v2065_v43, 0.0 }
 0x411   : > { %1766 = vrot.lane.b32.xlu1 %v2661_v38, %s3368_s16  ;;  %1764 = vrot.lane.b32.xlu0 %v2660_v59, %s3368_s16  ;;  %v2062_v59 = vmul.f32 %v3999_v12, %v3999_v12 }
 0x412   : > { %v2077_v6 = vpop.xlane.xlu0 %2076 }
 0x413   : > { %v2102_v30 = vsel %vm1146_vm2, %v2062_v59, 0.0  ;;  %v2117_v42 = vmax.f32 %v2077_v6, 1e-24 }
 0x416   : > { %v4272_v18 = vpop.xlane.xlu0 %1964 }
 0x417   : > { %v4258_v10 = vpop.xlane.xlu1 %1955 }
 0x41a   : > { %v1757_v57 = vpop.permute.xlu0 %1756 }
 0x41b   : > { %v2074_v38 = vpop.xlane.xlu1 %2073 }
 0x430   : > { %2094 = vadd.xlane.f32.xlu0 %v2093_v8  ;;  %v1953_v8 = vmul.f32 %v4043_v41, %v4043_v41 }
 0x432   : > { %v1999_v31 = vsel %vm1146_vm2, %v1953_v8, 0.0 }
 0x434   : > { %1982 = vadd.xlane.f32.xlu0 %v1981_v20  ;;  %v1950_v20 = vmul.f32 %v4011_v33, %v4011_v33 }
 0x435   : > { %1973 = vadd.xlane.f32.xlu1 %v1972_v16  ;;  %v1759_v16 = vpop.permute.xlu1 %1758 }
 0x436   : > { %v1990_v45 = vsel %vm1146_vm2, %v1950_v20, 0.0 }
 0x438   : > { %2100 = vadd.xlane.f32.xlu0 %v2099_v32  ;;  %v2064_v32 = vmul.f32 %v4019_v55, %v4019_v55 }
 0x439   : > { %2091 = vadd.xlane.f32.xlu1 %v2090_v47  ;;  %v2116_v47 = vmax.f32 %v2074_v38, 1e-24 }
 0x43b   : > { %3180 = vrsqrt.f32 %v2116_v47 }
 0x43c   : > { %1988 = vadd.xlane.f32.xlu0 %v1987_v56  ;;  %v2108_v56 = vsel %vm1146_vm2, %v2064_v32, 0.0  ;;  %3182 = vrsqrt.f32 %v2117_v42 }
 0x43d   : > { %1979 = vadd.xlane.f32.xlu1 %v1978_v50  ;;  %v1952_v50 = vmul.f32 %v4840_v40, %v4840_v40 }
 0x440   : > { %2106 = vadd.xlane.f32.xlu0 %v2105_v34 }
 0x441   : > { %2097 = vadd.xlane.f32.xlu1 %v2096_v36  ;;  %v1996_v36 = vsel %vm1146_vm2, %v1952_v50, 0.0 }
 0x444   : > { %1994 = vadd.xlane.f32.xlu0 %v1993_v63 }
 0x445   : > { %1985 = vadd.xlane.f32.xlu1 %v1984_v23  ;;  %v3181_v43 = vpop.eup %3180 }
 0x446   : > { %v3183_v23 = vpop.eup %3182  ;;  %v2148_v59 = vmul.f32 %v3181_v43, %v3911_v9  ;;  %v1803_v9 = vsel %vm1146_vm2, %v1757_v57, 0.0 }
 0x448   : > { %2112 = vadd.xlane.f32.xlu0 %v2111_v17  ;;  %v2149_v17 = vmul.f32 %v3183_v23, %v3923_v22  ;;  %v1805_v22 = vsel %vm1146_vm2, %v1759_v16, 0.0 }
 0x449   : > { %2103 = vadd.xlane.f32.xlu1 %v2102_v30 }
 0x44a   : > { %v3035_v8 = vpack.i.bf16 %v2149_v17, %v2148_v59 }
 0x44b   : > { %v2083_v34 = vpop.xlane.xlu0 %2082 }
 0x44c   : > { %2000 = vadd.xlane.f32.xlu0 %v1999_v31  ;;  %v2119_v37 = vmax.f32 %v2083_v34, 1e-24 }
 0x44d   : > { %1991 = vadd.xlane.f32.xlu1 %v1990_v45 }
 0x44f   : > { %v4293_v45 = vpop.xlane.xlu0 %1970 }
 0x450   : > { %v4281_v29 = vpop.xlane.xlu1 %1961 }
 0x451   : > { %2109 = vadd.xlane.f32.xlu1 %v2108_v56 }
 0x453   : > { %v1761_v32 = vpop.permute.xlu0 %1760 }
 0x454   : > { %v2080_v58 = vpop.xlane.xlu1 %2079 }
 0x455   : > { %v2118_v63 = vmax.f32 %v2080_v58, 1e-24  ;;  %1997 = vadd.xlane.f32.xlu1 %v1996_v36 }
 0x457   : > { %3184 = vrsqrt.f32 %v2118_v63 }
 0x458   : > { %3186 = vrsqrt.f32 %v2119_v37  ;;  %v1763_v56 = vpop.permute.xlu1 %1762 }
 0x459   : > { %v1809_v36 = vsel %vm1146_vm2, %v1763_v56, 0.0 }
 0x461   : > { %v3185_v38 = vpop.eup %3184 }
 0x462   : > { %v3187_v6 = vpop.eup %3186  ;;  %v2150_v30 = vmul.f32 %v3185_v38, %v3926_v7  ;;  %v1804_v7 = vadd.f32 %v1803_v9, %v4183_v28 }
 0x463   : > { %v2151_v20 = vmul.f32 %v3187_v6, %v3939_v19  ;;  %v1807_v19 = vsel %vm1146_vm2, %v1761_v32, 0.0 }
 0x464   : > { %v1806_v58 = vadd.f32 %v1805_v22, %v1804_v7 }
 0x465   : > { %v3040_v31 = vpack.i.bf16 %v2151_v20, %v2150_v30 }
 0x466   : > { %3036 = vrot.lane.b32.xlu1 %v3035_v8, %s4816_s22  ;;  %v1808_v63 = vadd.f32 %v1807_v19, %v1806_v58 }
 0x468   : > { %v1810_v16 = vadd.f32 %v1809_v36, %v1808_v63 }
 0x46a   : > { %3041 = vrot.lane.b32.xlu1 %v3040_v31, %s4816_s22 }
 0x484   : > { %v2089_v47 = vpop.xlane.xlu0 %2088 }
 0x485   : > { %v2121_v34 = vmax.f32 %v2089_v47, 1e-24 }
 0x487   : > { %3188 = vrsqrt.f32 %v2121_v34 }
 0x488   : > { %v4297_v50 = vpop.xlane.xlu0 %1976 }
 0x489   : > { %v4300_v42 = vpop.xlane.xlu1 %1967 }
 0x48c   : > { %v1765_v37 = vpop.permute.xlu0 %1764 }
 0x48d   : > { %v2086_v43 = vpop.xlane.xlu1 %2085  ;;  %v1811_v57 = vsel %vm1146_vm2, %v1765_v37, 0.0 }
 0x48e   : > { %v2120_v23 = vmax.f32 %v2086_v43, 1e-24  ;;  %v1812_v59 = vadd.f32 %v1811_v57, %v1810_v16 }
 0x490   : > { %3190 = vrsqrt.f32 %v2120_v23 }
 0x491   : > { %v1767_v38 = vpop.permute.xlu1 %1766  ;;  %v3189_v6 = vpop.eup %3188 }
 0x492   : > { %v1813_v28 = vsel %vm1146_vm2, %v1767_v38, 0.0  ;;  %v2153_v20 = vmul.f32 %v3189_v6, %v3957_v46 }
 0x493   : > { %v1814_v17 = vadd.f32 %v1813_v28, %v1812_v59 }
 0x495   : > { %1815 = vadd.xlane.f32.xlu0 %v1814_v17 }
 0x49a   : > { %v3191_v8 = vpop.eup %3190 }
 0x49b   : > { %v2152_v30 = vmul.f32 %v3191_v8, %v3942_v21 }
 0x49d   : > { %v3045_v31 = vpack.i.bf16 %v2153_v20, %v2152_v30 }
 0x49f   : > { %3046 = vrot.lane.b32.xlu1 %v3045_v31, %s4816_s22 }
 0x4ab   : > { %3031 = vrot.lane.b32.xlu0 %v3030_v60, %s4816_s22 }
 0x4ad   : > { %v4313_v32 = vpop.f32.mrb[16].mxu0 }
 0x4ae   : > { %v4315_v47 = vpop.f32.mrb[17].mxu0 }
 0x4b4   : > { %v4317_v56 = vpop.f32.mrb[18].mxu0 }
 0x4b5   : > { %v4319_v9 = vpop.f32.mrb[19].mxu0 }
 0x4b8   : > { %v4321_v22 = vpop.f32.mrb[20].mxu0 }
 0x4b9   : > { %v4323_v21 = vpop.f32.mrb[21].mxu0 }
 0x4bc   : > { %v4325_v46 = vpop.f32.mrb[22].mxu0 }
 0x4bd   : > { %v4327_v7 = vpop.f32.mrb[23].mxu0  ;;  %v2095_v19 = vpop.xlane.xlu0 %2094 }
 0x4be   : > { %v2123_v58 = vmax.f32 %v2095_v19, 1e-24 }
 0x4c0   : > { %v4329_v34 = vpop.f32.mrb[24].mxu0  ;;  %3192 = vrsqrt.f32 %v2123_v58 }
 0x4c1   : > { %v4331_v35 = vpop.f32.mrb[25].mxu0  ;;  %v4333_v1 = vpop.xlane.xlu0 %1982 }
 0x4c2   : > { %v4335_v60 = vpop.xlane.xlu1 %1973 }
 0x4c4   : > { %v4337_v36 = vpop.f32.mrb[26].mxu0 }
 0x4c5   : > { %v4339_v37 = vpop.f32.mrb[27].mxu0  ;;  %v2101_v63 = vpop.xlane.xlu0 %2100 }
 0x4c6   : > { %v2092_v43 = vpop.xlane.xlu1 %2091  ;;  %v2125_v28 = vmax.f32 %v2101_v63, 1e-24 }
 0x4c7   : > { %v2122_v57 = vmax.f32 %v2092_v43, 1e-24 }
 0x4c8   : > { %v4341_v23 = vpop.f32.mrb[28].mxu0 }
 0x4c9   : > { %3194 = vrsqrt.f32 %v2122_v57  ;;  %v4343_v16 = vpop.f32.mrb[29].mxu0  ;;  %v4345_v59 = vpop.xlane.xlu0 %1988 }
 0x4ca   : > { %v4347_v38 = vpop.xlane.xlu1 %1979  ;;  %3196 = vrsqrt.f32 %v2125_v28  ;;  %v3193_v31 = vpop.eup %3192 }
 0x4cb   : > { %v2155_v63 = vmul.f32 %v3193_v31, %v3976_v62 }
 0x4cc   : > { %v4349_v17 = vpop.f32.mrb[32].mxu1 }
 0x4cd   : > { %v4351_v6 = vpop.f32.mrb[33].mxu1  ;;  %v2107_v8 = vpop.xlane.xlu0 %2106 }
 0x4ce   : > { %v2098_v30 = vpop.xlane.xlu1 %2097  ;;  %v2127_v57 = vmax.f32 %v2107_v8, 1e-24 }
 0x4cf   : > { %v2124_v20 = vmax.f32 %v2098_v30, 1e-24 }
 0x4d1   : > { %3198 = vrsqrt.f32 %v2124_v20  ;;  %v4353_v19 = vpop.xlane.xlu0 %1994 }
 0x4d2   : > { %v4355_v58 = vpop.xlane.xlu1 %1985  ;;  %3200 = vrsqrt.f32 %v2127_v57  ;;  %v4374_v57 = vld [vmem:[%s4797_s9] ss:$0 sm:$0xff] }
 0x4d3   : > { %v3195_v43 = vpop.eup %3194 }
 0x4d4   : > { %v2154_v40 = vmul.f32 %v3195_v43, %v3960_v2  ;;  %v3197_v28 = vpop.eup %3196 }
 0x4d5   : > { %v2113_v54 = vpop.xlane.xlu0 %2112  ;;  %v2157_v8 = vmul.f32 %v3197_v28, %v3996_v5  ;;  %v1492_v28 = vadd.f32 %v4374_v57, %v4319_v9  ;;  %v1517_v9 = vadd.f32 %v4325_v46, %v4374_v57 }
 0x4d6   : > { %v2104_v41 = vpop.xlane.xlu1 %2103  ;;  %v3050_v33 = vpack.i.bf16 %v2155_v63, %v2154_v40  ;;  %v2129_v15 = vmax.f32 %v2113_v54, 1e-24  ;;  %v1497_v63 = vadd.f32 %v4317_v56, %v4374_v57  ;;  %v1482_v56 = vadd.f32 %v4374_v57, %v4315_v47 }
 0x4d7   : > { %v2126_v39 = vmax.f32 %v2104_v41, 1e-24 }
 0x4d8   : > { %3051 = vrot.lane.b32.xlu0 %v3050_v33, %s4816_s22 }
 0x4d9   : > { %3202 = vrsqrt.f32 %v2126_v39 }
 0x4da   : > { %v4360_v30 = vpop.xlane.xlu1 %1991  ;;  %3204 = vrsqrt.f32 %v2129_v15 }
 0x4db   : > { %v3199_v20 = vpop.eup %3198 }
 0x4dc   : > { %v2156_v52 = vmul.f32 %v3199_v20, %v3979_v27  ;;  %v3201_v41 = vpop.eup %3200 }
 0x4dd   : > { %v2159_v39 = vmul.f32 %v3201_v41, %v4016_v53 }
 0x4de   : > { %v2110_v2 = vpop.xlane.xlu1 %2109  ;;  %v3055_v43 = vpack.i.bf16 %v2157_v8, %v2156_v52  ;;  %v4390_v8 = vmax.f32 %v1492_v28, 0.0 }
 0x4df   : > { %v2128_v62 = vmax.f32 %v2110_v2, 1e-24 }
 0x4e0   : > { %3056 = vrot.lane.b32.xlu1 %v3055_v43, %s4816_s22  ;;  %v1828_v43 = vmul.f32 %v4390_v8, %v4390_v8 }
 0x4e1   : > { %3206 = vrsqrt.f32 %v2128_v62 }
 0x4e3   : > { %v3203_v40 = vpop.eup %3202 }
 0x4e4   : > { %v2158_v33 = vmul.f32 %v3203_v40, %v3999_v12  ;;  %v3205_v54 = vpop.eup %3204  ;;  %v1487_v12 = vadd.f32 %v4313_v32, %v4374_v57  ;;  %v1507_v32 = vadd.f32 %v4321_v22, %v4374_v57  ;;  %v4404_v40 = vmax.f32 %v1482_v56, 0.0 }
 0x4e5   : > { %v2161_v52 = vmul.f32 %v3205_v54, %v4035_v13  ;;  %v4384_v13 = vmax.f32 %v1497_v63, 0.0  ;;  %v1502_v22 = vadd.f32 %v4374_v57, %v4323_v21  ;;  %v1522_v63 = vadd.f32 %v4374_v57, %v4331_v35 }
 0x4e6   : > { %v3060_v31 = vpack.i.bf16 %v2159_v39, %v2158_v33  ;;  %v4378_v53 = vmax.f32 %v1487_v12, 0.0  ;;  %v4399_v62 = vmax.f32 %v1507_v32, 0.0  ;;  %v4410_v33 = vmax.f32 %v1517_v9, 0.0 }
 0x4e7   : > { %v1829_v20 = vmul.f32 %v4384_v13, %v4384_v13  ;;  %v1527_v39 = vadd.f32 %v4329_v34, %v4374_v57  ;;  %v1826_v46 = vmul.f32 %v4404_v40, %v4404_v40  ;;  %v4417_v54 = vmax.f32 %v1502_v22, 0.0 }
 0x4e8   : > { %3061 = vrot.lane.b32.xlu0 %v3060_v31, %s4816_s22  ;;  %v1831_v47 = vmul.f32 %v4399_v62, %v4399_v62  ;;  %v1848_v31 = vsel %vm452_vm0, %v1828_v43, 0.0  ;;  %v1833_v21 = vmul.f32 %v4410_v33, %v4410_v33  ;;  %v1532_v35 = vadd.f32 %v4374_v57, %v4339_v37 }
 0x4e9   : > { %v1851_v41 = vsel %vm452_vm0, %v1829_v20, 0.0  ;;  %v1542_v37 = vadd.f32 %v4374_v57, %v4343_v16  ;;  %v1552_v16 = vadd.f32 %v4374_v57, %v4351_v6 }
 0x4ea   : > { %v1857_v34 = vsel %vm452_vm0, %v1831_v47, 0.0  ;;  %v1863_v20 = vsel %vm452_vm0, %v1833_v21, 0.0  ;;  %v4458_v47 = vmax.f32 %v1532_v35, 0.0 }
 0x4eb   : > { %v3207_v27 = vpop.eup %3206 }
 0x4ec   : > { %v2160_v5 = vmul.f32 %v3207_v27, %v4019_v55  ;;  %v1827_v55 = vmul.f32 %v4378_v53, %v4378_v53  ;;  %v1512_v27 = vadd.f32 %v4374_v57, %v4327_v7  ;;  %v1842_v7 = vsel %vm452_vm0, %v1826_v46, 0.0 }
 0x4ed   : > { %v1836_v21 = vmul.f32 %v4458_v47, %v4458_v47 }
 0x4ee   : > { %v3065_v15 = vpack.i.bf16 %v2161_v52, %v2160_v5  ;;  %v1845_v2 = vsel %vm452_vm0, %v1827_v55, 0.0  ;;  %v4423_v5 = vmax.f32 %v1527_v39, 0.0  ;;  %v1537_v52 = vadd.f32 %v4337_v36, %v4374_v57 }
 0x4ef   : > { %v4430_v12 = vmax.f32 %v1512_v27, 0.0  ;;  %v1547_v36 = vadd.f32 %v4341_v23, %v4374_v57  ;;  %v1557_v23 = vadd.f32 %v4349_v17, %v4374_v57  ;;  %v4467_v17 = vpop.xlane.xlu0 %2000 }
 0x4f0   : > { %3066 = vrot.lane.b32.xlu1 %v3065_v15, %s4816_s22  ;;  %v1830_v15 = vmul.f32 %v4417_v54, %v4417_v54  ;;  %v1835_v55 = vmul.f32 %v4423_v5, %v4423_v5  ;;  %v4437_v28 = vmax.f32 %v1537_v52, 0.0  ;;  %v4472_v52 = vmax.f32 %v1542_v37, 0.0  ;;  %s3272_s22 = scalar_lea.vmem %s4502_s14, 16 }
 0x4f1   : > { %v1832_v32 = vmul.f32 %v4430_v12, %v4430_v12  ;;  %v4451_v9 = vmax.f32 %v1547_v36, 0.0  ;;  %v4465_v46 = vmax.f32 %v1557_v23, 0.0  ;;  %v4482_v36 = vmax.f32 %v1552_v16, 0.0  ;;  %v4845_v16 = vld [vmem:[#allocation8_spill] sm:$0xff]  ;;  %p3273_p11 = scmp.ne.s32.totalorder %s4502_s14, %s3272_s22  ;;  %p3280_p1 = scmp.lt.s32.totalorder %s3278_s2, %s3272_s22 }
 0x4f2   : > { %v1854_v56 = vsel %vm452_vm0, %v1830_v15, 0.0  ;;  %v1837_v43 = vmul.f32 %v4437_v28, %v4437_v28 }
 0x4f3   : > { %v1860_v39 = vsel %vm452_vm0, %v1832_v32, 0.0  ;;  %v1841_v15 = vmul.f32 %v4465_v46, %v4465_v46  ;;  %v1872_v32 = vsel %vm452_vm0, %v1836_v21, 0.0  ;;  %v1840_v35 = vmul.f32 %v4482_v36, %v4482_v36  ;;  %v4844_v21 = vld [vmem:[#allocation9_spill] sm:$0xff]  ;;  %p3274_p12 = pnand %p3273_p11, %p3472_p5  ;;  %p3281_p2 = por %p3280_p1, %p3279_p0 }
 0x4f4   : > { %v1875_v27 = vsel %vm452_vm0, %v1837_v43, 0.0 }
 0x4f5   : > { %v1887_v57 = vsel %vm452_vm0, %v1841_v15, 0.0  ;;  %p3275_p13 = pneg %p3274_p12 }
 0x4f7   : > { %p3282_p3 = pnand %p3281_p2, %p3275_p13 }
 0x507   : > { %1846 = vadd.xlane.f32.xlu0 %v1845_v2  ;;  %v4444_v2 = vmax.f32 %v1522_v63, 0.0 }
 0x509   : > { %v1834_v22 = vmul.f32 %v4444_v2, %v4444_v2 }
 0x50b   : > { %1852 = vadd.xlane.f32.xlu0 %v1851_v41  ;;  %v1869_v41 = vsel %vm452_vm0, %v1835_v55, 0.0  ;;  %v1838_v55 = vmul.f32 %v4472_v52, %v4472_v52 }
 0x50d   : > { %v1878_v43 = vsel %vm452_vm0, %v1838_v55, 0.0 }
 0x50f   : > { %1849 = vadd.xlane.f32.xlu0 %v1848_v31  ;;  %v1839_v31 = vmul.f32 %v4451_v9, %v4451_v9 }
 0x513   : > { %1858 = vadd.xlane.f32.xlu0 %v1857_v34  ;;  %v1866_v34 = vsel %vm452_vm0, %v1834_v22, 0.0 }
 0x514   : > { %1843 = vadd.xlane.f32.xlu1 %v1842_v7  ;;  %v1881_v7 = vsel %vm452_vm0, %v1839_v31, 0.0  ;;  %v4842_v31 = vld [vmem:[#allocation10_spill] sm:$0xff] }
 0x517   : > { %1864 = vadd.xlane.f32.xlu0 %v1863_v20 }
 0x518   : > { %1855 = vadd.xlane.f32.xlu1 %v1854_v56 }
 0x51b   : > { %1870 = vadd.xlane.f32.xlu0 %v1869_v41  ;;  %v1884_v41 = vsel %vm452_vm0, %v1840_v35, 0.0 }
 0x51c   : > { %1861 = vadd.xlane.f32.xlu1 %v1860_v39  ;;  %v4841_v39 = vld [vmem:[#allocation11_spill] sm:$0xff] }
 0x51f   : > { %1876 = vadd.xlane.f32.xlu0 %v1875_v27  ;;  %v4843_v27 = vpack.i.bf16 %v4841_v39, %v4842_v31 }
 0x520   : > { %1867 = vadd.xlane.f32.xlu1 %v1866_v34  ;;  %v4846_v34 = vpack.i.bf16 %v4844_v21, %v4845_v16 }
 0x522   : > { %v1816_v63 = vpop.xlane.xlu0 %1815 }
 0x523   : > { %v1817_v20 = vrot.slane %v1816_v63, 4  ;;  %1882 = vadd.xlane.f32.xlu0 %v1881_v7 }
 0x524   : > { %1873 = vadd.xlane.f32.xlu1 %v1872_v32 }
 0x525   : > { %v1818_v6 = vadd.f32 %v1817_v20, %v1816_v63 }
 0x527   : > { %v1819_v56 = vrot.slane %v1818_v6, 2  ;;  %1888 = vadd.xlane.f32.xlu0 %v1887_v57 }
 0x528   : > { %1879 = vadd.xlane.f32.xlu1 %v1878_v43 }
 0x529   : > { %v1820_v23 = vadd.f32 %v1819_v56, %v1818_v6 }
 0x52b   : > { %v1821_v22 = vrot.slane %v1820_v23, 1 }
 0x52c   : > { %1885 = vadd.xlane.f32.xlu1 %v1884_v41 }
 0x52d   : > { %v1822_v37 = vadd.f32 %v1821_v22, %v1820_v23 }
 0x52f   : > { %2950 = vpush %v1822_v37 }
 0x53d   : > { %3076 = vrot.lane.b32.xlu0 %v4843_v27, %s3370_s15  ;;  %3071 = vrot.lane.b32.xlu1 %v4846_v34, %s3370_s15  ;;  %s2441_s15 = scalar_lea.sflag [#allocation5], %s4499_s12 }
 0x560   : > { %s2951_s24 = spop %2950 }
 0x561   : > { %v1824_v15 = vstv %s2951_s24 }
 0x562   : > { %1825 = vst [vmem:[%s406_s30] sm:$0x1] %v1824_v15 }
 0x563   : > { %3285 = shalt.err (!%p3282_p3)
}
 0x564   : > { %s3286_s29 = scalar_lea.hbm %s4508_s13, 16  ;;  %s3290_s0 = scalar_lea.hbm %s4799_s11, 32 }
 0x565   : > { %p3287_p4 = scmp.ne.s32.totalorder %s4508_s13, %s3286_s29  ;;  %p3291_p9 = scmp.lt.u32.totalorder %s4508_s13, %s4799_s11 }
 0x566   : > { %p3292_p10 = scmp.lt.u32.totalorder %s3290_s0, %s3286_s29  ;;  %p3294_p12 = scmp.lt.u32.totalorder %s3286_s29, %s4508_s13 }
 0x567   : > { %p3288_p7 = pnand %p3287_p4, %p3472_p5 }
 0x568   : > { %p3293_p11 = por %p3292_p10, %p3291_p9 }
 0x569   : > { %p3289_p8 = pneg %p3288_p7 }
 0x56a   : > { %p3295_p13 = por %p3294_p12, %p3293_p11 }
 0x56c   : > { %p3296_p0 = pnand %p3295_p13, %p3289_p8 }
 0x56e   : > { %3299 = shalt.err (!%p3296_p0)
}
 0x56f   : > { %2953 = dma.vmem_to_hbm [thread:$0]  (%p3472_p5), %s4502_s14, 16, %s4508_s13, %s2441_s15   ;;  %v4532_v63 = vpop.xlane.xlu1 %1997  ;;  %v4534_v7 = vpop.permute.xlu0 %3031  ;;  %v2003_v32 = vmax.f32 %v4169_v51, 1e-24  ;;  %v2005_v6 = vmax.f32 %v4272_v18, 1e-24  ;;  %v3009_v27 = vunpack.i.h.bf16 %v4100_v24  ;;  %v3004_v16 = vunpack.i.h.bf16 %v4109_v11 }
 0x570   : > { %v2002_v57 = vmax.f32 %v4258_v10, 1e-24  ;;  %v2007_v56 = vmax.f32 %v4293_v45, 1e-24  ;;  %v2004_v23 = vmax.f32 %v4281_v29, 1e-24 }
 0x571   : > { %3208 = vrsqrt.f32 %v2003_v32  ;;  %v2009_v41 = vmax.f32 %v4297_v50, 1e-24  ;;  %v2006_v51 = vmax.f32 %v4300_v42, 1e-24  ;;  %v2011_v37 = vmax.f32 %v4333_v1, 1e-24 }
 0x572   : > { %3210 = vrsqrt.f32 %v2005_v6  ;;  %v2008_v45 = vmax.f32 %v4335_v60, 1e-24  ;;  %v2013_v29 = vmax.f32 %v4345_v59, 1e-24  ;;  %v2010_v42 = vmax.f32 %v4347_v38, 1e-24 }
 0x573   : > { %v4536_v55 = vpop.permute.xlu1 %3036  ;;  %v4538_v20 = vpop.permute.xlu0 %3051  ;;  %3212 = vrsqrt.f32 %v2002_v57  ;;  %v3008_v1 = vunpack.i.l.bf16 %v4100_v24  ;;  %v2012_v60 = vmax.f32 %v4355_v58, 1e-24  ;;  %v3034_v32 = vunpack.i.h.bf16 %v4534_v7  ;;  %s2573_s2 = sshll.u32 %s4499_s12, 7  ;;  %s2702_s16 = sshll.u32 %s3455_s21, 11 }
 0x574   : > { %3214 = vrsqrt.f32 %v2007_v56  ;;  %v4849_v56 = vld [vmem:[#allocation12_spill] sm:$0xff]  ;;  %vm2306_vm3 = vcmask 130048   ;;  %s4600_s22 = scalar_lea.vmem [#allocation2], %s2573_s2  ;;  %s4743_s29 = scalar_lea.hbm %s4798_s10, %s2702_s16 }
 0x575   : > { %3216 = vrsqrt.f32 %v2004_v23  ;;  %s2454_s14 = sshll.u32 %s4600_s22, 4  ;;  %s2436_s30 = scalar_lea.sflag [#allocation3], %s4499_s12  ;;  %s4736_s14 = int_to_ptr.vmem [resolvable:$true] %s2454_s14 }
 0x576   : > { %s3300_s24 = scalar_lea.vmem %s4736_s14, 2048  ;;  %s3372_s21 = smov [#allocation2]  }
 0x577   : > { %v4543_v35 = vpop.permute.xlu0 %3061  ;;  %v4546_v43 = vpop.permute.xlu1 %3041  ;;  %p3301_p1 = scmp.ne.s32.totalorder %s4736_s14, %s3300_s24  ;;  %s3304_s0 = sshll.u32 %s3372_s21, 4  ;;  %s3305_s0 = int_to_ptr.vmem [resolvable:$false] %s3304_s0 }
 0x578   : > { %s3306_s25 = scalar_lea.vmem %s3305_s0, 4096  ;;  %p3307_p4 = scmp.lt.s32.totalorder %s4736_s14, %s3305_s0 }
 0x579   : > { %p3302_p2 = pnand %p3301_p1, %p3472_p5  ;;  %p3308_p7 = scmp.lt.s32.totalorder %s3306_s25, %s3300_s24 }
 0x57b   : > { %v4551_v18 = vpop.permute.xlu1 %3046  ;;  %v3209_v21 = vpop.eup %3208  ;;  %p3303_p3 = pneg %p3302_p2  ;;  %p3309_p8 = por %p3308_p7, %p3307_p4 }
 0x57c   : > { %v3211_v15 = vpop.eup %3210 }
 0x57d   : > { %v3213_v57 = vpop.eup %3212  ;;  %p3310_p9 = pnand %p3309_p8, %p3303_p3 }
 0x57e   : > { %v3215_v58 = vpop.eup %3214  ;;  %v4578_v59 = vmul.f32 %v3213_v57, %v4849_v56 }
 0x57f   : > { %v4556_v31 = vpop.permute.xlu1 %3056 }
 0x583   : > { %v4565_v6 = vpop.permute.xlu1 %3066 }
 0x594   : > { %v1847_v22 = vpop.xlane.xlu0 %1846 }
 0x595   : > { %v1891_v10 = vmax.f32 %v1847_v22, 1e-24  ;;  %v2039_v22 = vmul.f32 %v3215_v58, %v3949_v25 }
 0x597   : > { %3218 = vrsqrt.f32 %v1891_v10  ;;  %v2035_v10 = vmul.f32 %v3209_v21, %v3907_v48 }
 0x598   : > { %3220 = vrsqrt.f32 %v2009_v41  ;;  %v1853_v39 = vpop.xlane.xlu0 %1852  ;;  %v2015_v41 = vmax.f32 %v4353_v19, 1e-24  ;;  %v3039_v19 = vunpack.i.h.bf16 %v4536_v55 }
 0x599   : > { %3222 = vrsqrt.f32 %v2006_v51  ;;  %v1893_v50 = vmax.f32 %v1853_v39, 1e-24  ;;  %v4847_v39 = vld [vmem:[#allocation21_spill] sm:$0xff]  ;;  %v2291_v51 = vsel %vm1146_vm2, %v2035_v10, %v3034_v32 }
 0x59a   : > { %3224 = vrsqrt.f32 %v2011_v37  ;;  %v3217_v37 = vpop.eup %3216  ;;  %v2308_v56 = vsel %vm2306_vm3, %v2291_v51, 0.0 }
 0x59b   : > { %3226 = vrsqrt.f32 %v1893_v50  ;;  %v4848_v50 = vld [vmem:[#allocation13_spill] sm:$0xff]  ;;  %v2036_v32 = vmul.f32 %v3217_v37, %v3918_v61 }
 0x59c   : > { %3228 = vrsqrt.f32 %v2008_v45  ;;  %v1850_v34 = vpop.xlane.xlu0 %1849  ;;  %v2017_v45 = vmax.f32 %v4467_v17, 1e-24 }
 0x59d   : > { %3230 = vrsqrt.f32 %v2013_v29  ;;  %v1892_v38 = vmax.f32 %v1850_v34, 1e-24  ;;  %v2037_v34 = vmul.f32 %v3211_v15, %v4848_v50  ;;  %v3038_v50 = vunpack.i.l.bf16 %v4536_v55 }
 0x59e   : > { %3232 = vrsqrt.f32 %v2010_v42 }
 0x59f   : > { %3234 = vrsqrt.f32 %v1892_v38 }
 0x5a0   : > { %3236 = vrsqrt.f32 %v2012_v60  ;;  %v1859_v42 = vpop.xlane.xlu0 %1858 }
 0x5a1   : > { %v3219_v23 = vpop.eup %3218  ;;  %v1895_v48 = vmax.f32 %v1859_v42, 1e-24  ;;  %v1844_v21 = vpop.xlane.xlu1 %1843  ;;  %3238 = vrsqrt.f32 %v2015_v41 }
 0x5a2   : > { %v3221_v38 = vpop.eup %3220  ;;  %v1923_v60 = vmul.f32 %v3219_v23, %v4378_v53  ;;  %v1890_v29 = vmax.f32 %v1844_v21, 1e-24  ;;  %v2014_v53 = vmax.f32 %v4360_v30, 1e-24  ;;  %v2293_v23 = vsel %vm1146_vm2, %v2037_v34, %v3039_v19 }
 0x5a3   : > { %v3223_v15 = vpop.eup %3222  ;;  %3240 = vrsqrt.f32 %v1895_v48  ;;  %v2041_v58 = vmul.f32 %v3221_v38, %v3968_v49  ;;  %v2310_v49 = vsel %vm2306_vm3, %v2293_v23, 0.0 }
 0x5a4   : > { %v3225_v57 = vpop.eup %3224  ;;  %v2275_v10 = vsel %vm452_vm0, %v1923_v60, %v3004_v16  ;;  %3242 = vrsqrt.f32 %v1890_v29  ;;  %v1865_v41 = vpop.xlane.xlu0 %1864  ;;  %v2292_v16 = vsel %vm1146_vm2, %v2036_v32, %v3038_v50  ;;  %v2038_v29 = vmul.f32 %v3223_v15, %v3934_v4 }
 0x5a5   : > { %v3227_v17 = vpop.eup %3226  ;;  %v2686_v42 = vpack.c.bf16 %v2308_v56, %v2275_v10  ;;  %v1897_v55 = vmax.f32 %v1865_v41, 1e-24  ;;  %v1856_v21 = vpop.xlane.xlu1 %1855  ;;  %3244 = vrsqrt.f32 %v2017_v45  ;;  %v4596_v48 = vmul.f32 %v3225_v57, %v3988_v0  ;;  %v4850_v10 = vld [vmem:[#allocation14_spill] sm:$0xff] }
 0x5a6   : > { %v3229_v25 = vpop.eup %3228  ;;  %v1925_v61 = vmul.f32 %v3227_v17, %v4384_v13  ;;  %v1894_v51 = vmax.f32 %v1856_v21, 1e-24  ;;  %v3044_v13 = vunpack.i.h.bf16 %v4546_v43  ;;  %v3043_v50 = vunpack.i.l.bf16 %v4546_v43  ;;  %v4851_v17 = vld [vmem:[#allocation16_spill] sm:$0xff]  ;;  %v4852_v21 = vld [vmem:[#allocation15_spill] sm:$0xff] }
 0x5a7   : > { %v3231_v37 = vpop.eup %3230  ;;  %2420 = vst [vmem:[%s4600_s22 + $0x8] sm:$0xff] %v2686_v42  ;;  %3246 = vrsqrt.f32 %v1897_v55  ;;  %v2040_v34 = vmul.f32 %v3229_v25, %v3952_v26  ;;  %v3033_v57 = vunpack.i.l.bf16 %v4534_v7  ;;  %v3049_v43 = vunpack.i.h.bf16 %v4551_v18 }
 0x5a8   : > { %v3233_v30 = vpop.eup %3232  ;;  %v2277_v45 = vsel %vm452_vm0, %v1925_v61, %v3009_v27  ;;  %3248 = vrsqrt.f32 %v1894_v51  ;;  %v1871_v4 = vpop.xlane.xlu0 %1870  ;;  %v2309_v27 = vsel %vm2306_vm3, %v2292_v16, 0.0  ;;  %v2295_v23 = vsel %vm1146_vm2, %v2039_v22, %v3044_v13 }
 0x5a9   : > { %v3235_v0 = vpop.eup %3234  ;;  %3250 = vrsqrt.f32 %v2014_v53  ;;  %v2688_v19 = vpack.c.bf16 %v2310_v49, %v2277_v45  ;;  %v1899_v38 = vmax.f32 %v1871_v4, 1e-24  ;;  %v1862_v60 = vpop.xlane.xlu1 %1861  ;;  %v4614_v41 = vmul.f32 %v3233_v30, %v4850_v10 }
 0x5aa   : > { %v3237_v15 = vpop.eup %3236  ;;  %v1924_v32 = vmul.f32 %v3235_v0, %v4390_v8  ;;  %v1896_v56 = vmax.f32 %v1862_v60, 1e-24  ;;  %v4617_v53 = vmul.f32 %v3231_v37, %v4851_v17  ;;  %v2016_v55 = vmax.f32 %v4532_v63, 1e-24 }
 0x5ab   : > { %2422 = vst [vmem:[%s4600_s22 + $0x18] sm:$0xff] %v2688_v19  ;;  %3252 = vrsqrt.f32 %v1899_v38  ;;  %v4620_v26 = vpop.eup %3238  ;;  %v4629_v25 = vmul.f32 %v3237_v15, %v4852_v21  ;;  %v2294_v22 = vsel %vm1146_vm2, %v2038_v29, %v3043_v50  ;;  %v2290_v24 = vsel %vm1146_vm2, %v4578_v59, %v3033_v57 }
 0x5ac   : > { %v2276_v8 = vsel %vm452_vm0, %v1924_v32, %v3008_v1  ;;  %3254 = vrsqrt.f32 %v1896_v56  ;;  %v1877_v7 = vpop.xlane.xlu0 %1876  ;;  %v2312_v49 = vsel %vm2306_vm3, %v2295_v23, 0.0  ;;  %v3048_v13 = vunpack.i.l.bf16 %v4551_v18 }
 0x5ad   : > { %v3241_v42 = vpop.eup %3240  ;;  %v2687_v61 = vpack.c.bf16 %v2309_v27, %v2276_v8  ;;  %v1901_v51 = vmax.f32 %v1877_v7, 1e-24  ;;  %v1868_v37 = vpop.xlane.xlu1 %1867  ;;  %v2297_v4 = vsel %vm1146_vm2, %v2041_v58, %v3049_v43  ;;  %v3054_v29 = vunpack.i.h.bf16 %v4538_v20 }
 0x5ae   : > { %v3243_v16 = vpop.eup %3242  ;;  %v1927_v1 = vmul.f32 %v3241_v42, %v4399_v62  ;;  %v1898_v30 = vmax.f32 %v1868_v37, 1e-24  ;;  %v4853_v0 = vunpack.i.h.bf16 %v4117_v3  ;;  %v2307_v18 = vsel %vm2306_vm3, %v2290_v24, 0.0 }
 0x5af   : > { %2421 = vst [vmem:[%s4600_s22 + $0x10] sm:$0xff] %v2687_v61  ;;  %v1922_v63 = vmul.f32 %v3243_v16, %v4404_v40  ;;  %3256 = vrsqrt.f32 %v1901_v51  ;;  %v4639_v45 = vpop.eup %3244  ;;  %v4854_v40 = vunpack.i.l.bf16 %v4109_v11  ;;  %v2311_v57 = vsel %vm2306_vm3, %v2294_v22, 0.0 }
 0x5b0   : > { %v2279_v59 = vsel %vm452_vm0, %v1927_v1, %v4853_v0  ;;  %3258 = vrsqrt.f32 %v1898_v30  ;;  %v1883_v62 = vpop.xlane.xlu0 %1882  ;;  %v2296_v17 = vsel %vm1146_vm2, %v2040_v34, %v3048_v13  ;;  %v2314_v23 = vsel %vm2306_vm3, %v2297_v4, 0.0 }
 0x5b1   : > { %v3247_v19 = vpop.eup %3246  ;;  %v2690_v38 = vpack.c.bf16 %v2312_v49, %v2279_v59  ;;  %v2274_v60 = vsel %vm452_vm0, %v1922_v63, %v4854_v40  ;;  %v1903_v15 = vmax.f32 %v1883_v62, 1e-24  ;;  %v1874_v58 = vpop.xlane.xlu1 %1873  ;;  %v2299_v43 = vsel %vm1146_vm2, %v4596_v48, %v3054_v29 }
 0x5b2   : > { %v3249_v50 = vpop.eup %3248  ;;  %v2685_v32 = vpack.c.bf16 %v2307_v18, %v2274_v60  ;;  %v1929_v56 = vmul.f32 %v3247_v19, %v4410_v33  ;;  %v1900_v27 = vmax.f32 %v1874_v58, 1e-24  ;;  %v3053_v8 = vunpack.i.l.bf16 %v4538_v20  ;;  %v4859_v60 = vld [vmem:[#allocation18_spill] sm:$0xff] }
 0x5b3   : > { %v4652_v10 = vpop.eup %3250  ;;  %2424 = vst [vmem:[%s4600_s22 + $0x28] sm:$0xff] %v2690_v38  ;;  %v1926_v11 = vmul.f32 %v3249_v50, %v4417_v54  ;;  %3260 = vrsqrt.f32 %v1903_v15  ;;  %v4855_v7 = vunpack.i.h.bf16 %v4112_v44  ;;  %v3059_v21 = vunpack.i.h.bf16 %v4556_v31 }
 0x5b4   : > { %2419 = vst [vmem:[%s4600_s22] sm:$0xff] %v2685_v32  ;;  %3262 = vrsqrt.f32 %v1900_v27  ;;  %v1889_v42 = vpop.xlane.xlu0 %1888  ;;  %v4856_v54 = vunpack.i.l.bf16 %v4117_v3  ;;  %v2313_v1 = vsel %vm2306_vm3, %v2296_v17, 0.0  ;;  %v3058_v30 = vunpack.i.l.bf16 %v4556_v31 }
 0x5b5   : > { %v2281_v33 = vsel %vm452_vm0, %v1929_v56, %v4855_v7  ;;  %v3253_v34 = vpop.eup %3252  ;;  %v1905_v48 = vmax.f32 %v1889_v42, 1e-24  ;;  %v1880_v37 = vpop.xlane.xlu1 %1879  ;;  %3264 = vrsqrt.f32 %v2016_v55  ;;  %v2316_v3 = vsel %vm2306_vm3, %v2299_v43, 0.0  ;;  %v4861_v43 = vld [vmem:[#allocation17_spill] sm:$0xff]  ;;  %v4862_v7 = vld [vmem:[#allocation20_spill] sm:$0xff] }
 0x5b6   : > { %v2692_v61 = vpack.c.bf16 %v2314_v23, %v2281_v33  ;;  %v2278_v51 = vsel %vm452_vm0, %v1926_v11, %v4856_v54  ;;  %v3255_v20 = vpop.eup %3254  ;;  %v1931_v22 = vmul.f32 %v3253_v34, %v4423_v5  ;;  %v1902_v24 = vmax.f32 %v1880_v37, 1e-24 }
 0x5b7   : > { %v2689_v16 = vpack.c.bf16 %v2311_v57, %v2278_v51  ;;  %v1928_v49 = vmul.f32 %v3255_v20, %v4430_v12  ;;  %3266 = vrsqrt.f32 %v1905_v48  ;;  %v2298_v13 = vsel %vm1146_vm2, %v4614_v41, %v3053_v8 }
 0x5b8   : > { %2426 = vst [vmem:[%s4600_s22 + $0x38] sm:$0xff] %v2692_v61  ;;  %v4857_v55 = vunpack.i.h.bf16 %v4847_v39  ;;  %3268 = vrsqrt.f32 %v1902_v24  ;;  %v2301_v31 = vsel %vm1146_vm2, %v4617_v53, %v3059_v21  ;;  %v3064_v4 = vunpack.i.h.bf16 %v4543_v35  ;;  %v3077_v34 = vpop.permute.xlu0 %3076 }
 0x5b9   : > { %2423 = vst [vmem:[%s4600_s22 + $0x20] sm:$0xff] %v2689_v16  ;;  %v3257_v5 = vpop.eup %3256  ;;  %v4858_v29 = vunpack.i.l.bf16 %v4112_v44  ;;  %v1886_v41 = vpop.xlane.xlu1 %1885  ;;  %v3023_v62 = vunpack.i.l.bf16 %v4847_v39  ;;  %v2315_v40 = vsel %vm2306_vm3, %v2298_v13, 0.0  ;;  %v2300_v53 = vsel %vm1146_vm2, %v4629_v25, %v3058_v30  ;;  %v4863_v30 = vld [vmem:[#allocation19_spill] sm:$0xff] }
 0x5ba   : > { %v2283_v63 = vsel %vm452_vm0, %v1931_v22, %v4857_v55  ;;  %v3259_v59 = vpop.eup %3258  ;;  %v1933_v18 = vmul.f32 %v3257_v5, %v4437_v28  ;;  %v1904_v38 = vmax.f32 %v1886_v41, 1e-24  ;;  %v2047_v15 = vmul.f32 %v4620_v26, %v4859_v60 }
 0x5bb   : > { %v2694_v12 = vpack.c.bf16 %v2316_v3, %v2283_v63  ;;  %v2280_v0 = vsel %vm452_vm0, %v1928_v49, %v4858_v29  ;;  %v1930_v44 = vmul.f32 %v3259_v59, %v4444_v2  ;;  %v2318_v58 = vsel %vm2306_vm3, %v2301_v31, 0.0 }
 0x5bc   : > { %v2691_v19 = vpack.c.bf16 %v2313_v1, %v2280_v0  ;;  %v3063_v50 = vunpack.i.l.bf16 %v4543_v35  ;;  %v4860_v39 = vunpack.i.h.bf16 %v4120_v14  ;;  %3270 = vrsqrt.f32 %v1904_v38 }
 0x5bd   : > { %2428 = vst [vmem:[%s4600_s22 + $0x48] sm:$0xff] %v2694_v12  ;;  %v3261_v57 = vpop.eup %3260  ;;  %v2303_v25 = vsel %vm1146_vm2, %v2047_v15, %v3064_v4  ;;  %v3069_v32 = vunpack.i.h.bf16 %v4565_v6  ;;  %v2282_v2 = vsel %vm452_vm0, %v1930_v44, %v3023_v62  ;;  %v3072_v56 = vpop.permute.xlu1 %3071  ;;  %v3028_v11 = vunpack.i.l.bf16 %v4120_v14 }
 0x5be   : > { %2425 = vst [vmem:[%s4600_s22 + $0x30] sm:$0xff] %v2691_v19  ;;  %v2285_v28 = vsel %vm452_vm0, %v1933_v18, %v4860_v39  ;;  %v3263_v27 = vpop.eup %3262  ;;  %v2693_v17 = vpack.c.bf16 %v2315_v40, %v2282_v2  ;;  %v3074_v35 = vunpack.i.h.bf16 %v3072_v56  ;;  %v1935_v23 = vmul.f32 %v3261_v57, %v4451_v9 }
 0x5bf   : > { %v2696_v26 = vpack.c.bf16 %v2318_v58, %v2285_v28  ;;  %v2046_v8 = vmul.f32 %v4652_v10, %v4861_v43  ;;  %v2049_v33 = vmul.f32 %v4639_v45, %v4862_v7  ;;  %v1932_v42 = vmul.f32 %v3263_v27, %v4458_v47  ;;  %v3265_v21 = vpop.eup %3264 }
 0x5c0   : > { %v2317_v61 = vsel %vm2306_vm3, %v2300_v53, 0.0  ;;  %2427 = vst [vmem:[%s4600_s22 + $0x40] sm:$0xff] %v2693_v17  ;;  %v2287_v54 = vsel %vm452_vm0, %v1935_v23, %v3074_v35  ;;  %v2320_v14 = vsel %vm2306_vm3, %v2303_v25, 0.0  ;;  %v3068_v37 = vunpack.i.l.bf16 %v4565_v6 }
 0x5c1   : > { %2430 = vst [vmem:[%s4600_s22 + $0x58] sm:$0xff] %v2696_v26  ;;  %v3267_v9 = vpop.eup %3266  ;;  %v2302_v10 = vsel %vm1146_vm2, %v2046_v8, %v3063_v50  ;;  %v2305_v51 = vsel %vm1146_vm2, %v2049_v33, %v3069_v32  ;;  %v2284_v45 = vsel %vm452_vm0, %v1932_v42, %v3028_v11  ;;  %v2698_v48 = vpack.c.bf16 %v2320_v14, %v2287_v54 }
 0x5c2   : > { %v3269_v47 = vpop.eup %3268  ;;  %v2695_v20 = vpack.c.bf16 %v2317_v61, %v2284_v45  ;;  %v1937_v16 = vmul.f32 %v3267_v9, %v4465_v46  ;;  %v3079_v22 = vunpack.i.h.bf16 %v3077_v34  ;;  %v3073_v1 = vunpack.i.l.bf16 %v3072_v56 }
 0x5c3   : > { %v1934_v24 = vmul.f32 %v3269_v47, %v4472_v52  ;;  %2432 = vst [vmem:[%s4600_s22 + $0x68] sm:$0xff] %v2698_v48  ;;  %v2048_v49 = vmul.f32 %v3265_v21, %v4863_v30  ;;  %v2322_v3 = vsel %vm2306_vm3, %v2305_v51, 0.0  ;;  %v2319_v46 = vsel %vm2306_vm3, %v2302_v10, 0.0 }
 0x5c4   : > { %2429 = vst [vmem:[%s4600_s22 + $0x50] sm:$0xff] %v2695_v20  ;;  %v2289_v13 = vsel %vm452_vm0, %v1937_v16, %v3079_v22  ;;  %v3078_v31 = vunpack.i.l.bf16 %v3077_v34 }
 0x5c5   : > { %v2700_v55 = vpack.c.bf16 %v2322_v3, %v2289_v13  ;;  %v2286_v6 = vsel %vm452_vm0, %v1934_v24, %v3073_v1  ;;  %v2304_v52 = vsel %vm1146_vm2, %v2048_v49, %v3068_v37 }
 0x5c6   : > { %v3271_v63 = vpop.eup %3270  ;;  %v2697_v5 = vpack.c.bf16 %v2319_v46, %v2286_v6  ;;  %v2321_v12 = vsel %vm2306_vm3, %v2304_v52, 0.0 }
 0x5c7   : > { %2434 = vst [vmem:[%s4600_s22 + $0x78] sm:$0xff] %v2700_v55  ;;  %v1936_v4 = vmul.f32 %v3271_v63, %v4482_v36 }
 0x5c8   : > { %2431 = vst [vmem:[%s4600_s22 + $0x60] sm:$0xff] %v2697_v5 }
 0x5c9   : > { %v2288_v29 = vsel %vm452_vm0, %v1936_v4, %v3078_v31 }
 0x5ca   : > { %v2699_v0 = vpack.c.bf16 %v2321_v12, %v2288_v29 }
 0x5cc   : > { %2433 = vst [vmem:[%s4600_s22 + $0x70] sm:$0xff] %v2699_v0 }
 0x5cd   : > { %3313 = shalt.err (!%p3310_p9)
}
 0x5ce   : > { %s3314_s1 = scalar_lea.hbm %s4743_s29, 2048  ;;  %s3318_s16 = scalar_lea.hbm %s4798_s10, 4096 }
 0x5cf   : > { %p3315_p10 = scmp.ne.s32.totalorder %s4743_s29, %s3314_s1  ;;  %p3319_p13 = scmp.lt.u32.totalorder %s4743_s29, %s4798_s10 }
 0x5d0   : > { %p3320_p0 = scmp.lt.u32.totalorder %s3318_s16, %s3314_s1  ;;  %p3322_p2 = scmp.lt.u32.totalorder %s3314_s1, %s4743_s29 }
 0x5d1   : > { %p3316_p11 = pnand %p3315_p10, %p3472_p5 }
 0x5d2   : > { %p3321_p1 = por %p3320_p0, %p3319_p13 }
 0x5d3   : > { %p3317_p12 = pneg %p3316_p11 }
 0x5d4   : > { %p3323_p3 = por %p3322_p2, %p3321_p1 }
 0x5d6   : > { %p3324_p4 = pnand %p3323_p3, %p3317_p12 }
 0x5d8   : > { %3327 = shalt.err (!%p3324_p4)
}
 0x5d9   : > { %s3373_s24 = smov 128   ;;  %s4864_s21 = smov 8  }
 0x5da   : > { %2952 = dma.vmem_to_hbm [thread:$0]  (%p3472_p5), %s4736_s14, 2048, %s4743_s29, %s2436_s30, %s3373_s24, %s3373_s24, %s4864_s21  }
 0x5db PF: > { %p2963_p7 = scmp.ge.s32.totalorder %s3366_s20, 2  ;;  %s2482_s0 = sand.u32 1, %s3354_s17  }
 0x5dc   : > { %s2483_s25 = scalar_lea.sflag [#allocation3], %s2482_s0 }
 0x5dd   : > { %p2957_p8 = pnand %p2963_p7, %p3476_p6 }
 0x5df   : > { %3345 = dma.done.wait (!%p2957_p8), %s2483_s25, 2048  }
 0x5e0   : > { %3347 = vsyncadd (!%p2957_p8), %s2483_s25, 4294965248  ;;  %s2492_s1 = scalar_lea.sflag [#allocation5], %s2482_s0 }
 0x5e1   : > { %3349 = dma.done.wait (!%p2957_p8), %s2492_s1, 16  }
 0x5e2   : > { %3351 = vsyncadd (!%p2957_p8), %s2492_s1, 4294967280  ;;  %p25_p5 = scmp.ge.s32.totalorder %s3459_s23, 4   ;;  %s4865_s17 = smov %s3358_s18 }
 0x5e3   : > { %s4866_s18 = smov %s3362_s19  ;;  %s4867_s19 = smov %s3470_s26 }
 0x5e4   : > { %s4868_s20 = smov %s3459_s23  ;;  %27 = sbr.rel (!%p25_p5) target bundleno = 9 (0x9), region = 115 }
 0x5eb   :  { %2496 = vsyncpa [#allocation3], 1 }
 0x5ec   :  { %2498 = vsyncpa [#allocation3 + $0x1], 1 }
 0x5ed   :  { %2499 = vsyncpa [#allocation5], 1 }
 0x5ee   :  { %2501 = vsyncpa [#allocation5 + $0x1], 1 }

</bundles_post_ra>
